<compile_context>
chip_gen: v6e
topology: v6e:2x2x1
jax: 0.10.0
libtpu: 0.0.40
codegen_flags: <defaults>
</compile_context>

<pallas_src>
import numpy as np
import jax
import jax.numpy as jnp
from jax.experimental import pallas as pl
from jax.experimental.pallas import tpu as pltpu

# ----------------------------- config (EfficientDyATParams analogue) ------------------
SR = 16000
N_FFT = 128
WIN_LENGTH = 96
HOP = 50
N_MELS = 32
FMIN = 0.0
FMAX_AUG_RANGE = 1000
FMAX = SR // 2 - FMAX_AUG_RANGE // 2          # module always overrides fmax -> 7500
INPUT_NORMALIZATION = True
PREEMPH = 0.97

N_BINS = N_FFT // 2 + 1                       # onesided rfft bins = 65
N_BINS_PAD = 128                              # lane-padded; extra rows/cols exactly zero
PAD = N_FFT // 2                              # center=True reflect pad = 64
TAIL = N_FFT - 2 * HOP                        # 28: columns taken from hop-row t+2


# ----------------------------- host-side constant construction ------------------------
def _hann_padded():
    # torch.hann_window(win_length, periodic=False), centered in n_fft (torch.stft rule)
    n = np.arange(WIN_LENGTH, dtype=np.float64)
    w = 0.5 - 0.5 * np.cos(2.0 * np.pi * n / (WIN_LENGTH - 1))
    out = np.zeros(N_FFT, dtype=np.float64)
    left = (N_FFT - WIN_LENGTH) // 2
    out[left:left + WIN_LENGTH] = w
    return out


def _build_dft_mat_t():
    """Window-folded real/imag DFT operator, (2*N_BINS_PAD, N_FFT).

    spec_T[k, t]            = sum_j w[j] * yp[t*HOP + j] * exp(-2*pi*i*j*k/N_FFT)
    M[k,        j] = w[j] *  cos(2*pi*j*k/N_FFT)   (real part,  k < 65)
    M[128 + k,  j] = w[j] * (-sin(2*pi*j*k/N_FFT)) (imag part,  k < 65)
    rows 65..127 and 193..255 are zero (lane/sublane padding).
    """
    w = _hann_padded()
    j = np.arange(N_FFT, dtype=np.float64)[None, :]
    k = np.arange(N_BINS, dtype=np.float64)[:, None]
    ang = 2.0 * np.pi * j * k / N_FFT
    cr = np.cos(ang) * w[None, :]                      # (65, 128)
    ci = -np.sin(ang) * w[None, :]                     # (65, 128)
    M = np.zeros((2 * N_BINS_PAD, N_FFT), dtype=np.float32)
    M[:N_BINS, :] = cr
    M[N_BINS_PAD:N_BINS_PAD + N_BINS, :] = ci
    return M                                           # (256, 128)


def _mel_scale(f):
    return 1127.0 * np.log(1.0 + f / 700.0)


def _kaldi_mel_banks():
    # torchaudio.compliance.kaldi.get_mel_banks, vtln_warp_factor=1.0, then F.pad(...,(0,1))
    num_fft_bins = N_FFT // 2
    fft_bin_width = SR / N_FFT
    mel_low = _mel_scale(FMIN)
    mel_high = _mel_scale(float(FMAX))
    mel_delta = (mel_high - mel_low) / (N_MELS + 1)
    b = np.arange(N_MELS, dtype=np.float64)[:, None]
    left = mel_low + b * mel_delta
    center = mel_low + (b + 1.0) * mel_delta
    right = mel_low + (b + 2.0) * mel_delta
    mel = _mel_scale(fft_bin_width * np.arange(num_fft_bins, dtype=np.float64))[None, :]
    up = (mel - left) / (center - left)
    down = (right - mel) / (right - center)
    bank = np.maximum(0.0, np.minimum(up, down))       # (32, 64)
    out = np.zeros((N_MELS, N_BINS_PAD), dtype=np.float32)
    out[:, :num_fft_bins] = bank                       # Nyquist col (and lane pad) stay 0
    return out                                         # (32, 128)


# ----------------------------- Pallas kernel -------------------------------------------
def melspec_kernel(ft_ref, dft_ref, mel_ref, o_ref):
    # ft_ref : (1, N_FFT, TM) f32   frames for TM time steps, time on the lane axis
    # dft_ref: (2*N_BINS_PAD, N_FFT) f32   window-folded [cos ; -sin] DFT operator
    # mel_ref: (N_MELS, N_BINS_PAD) bf16   kaldi mel filterbank
    # o_ref  : (1, N_MELS, TM)      f32    lane-dense log-mel output tile
    ft = ft_ref[0]                                                      # (128, TM)

    # Windowed DFT: one K=128 contraction.  Explicit full-f32 precision (multi-pass
    # bf16 on the MXU) -- bf16 inputs could corrupt near-cancelling low-power bins
    # relative to the +1e-5 log floor.
    spec = jnp.dot(dft_ref[...], ft,
                   preferred_element_type=jnp.float32,
                   precision=jax.lax.Precision.HIGHEST)                 # (256, TM)

    re = spec[:N_BINS_PAD, :]
    im = spec[N_BINS_PAD:, :]
    power = re * re + im * im                                           # (128, TM) f32

    # Mel projection in bf16 (all-positive operands -> no cancellation), f32 accumulate.
    # Tiny powers flushed by the bf16 cast are masked by the +1e-5 log floor (intentional).
    mel = jnp.dot(mel_ref[...], power.astype(jnp.bfloat16),
                  preferred_element_type=jnp.float32)                   # (32, TM)

    o_ref[0] = (jnp.log(mel + 1e-5) + 4.5) * 0.2


# ----------------------------- wrapper --------------------------------------------------
def _round_up(v, m):
    return (v + m - 1) // m * m


def _choose_tm(T, B):
    # Large tiles: amortize per-grid-step overhead and fill the 256-row MXU (v6e/v7x).
    tm = min(512, _round_up(T, 128))
    # v7x dual TensorCore: keep >= 2 'parallel' grid steps when B == 1 and the clip
    # is long enough to split (no effect on single-TC v5e/v6e).
    if B == 1 and tm >= T and T > 128:
        tm = _round_up(-(-T // 2), 128)
    return tm


def augment_mel_stft(x):
    """x: (B, 1, L) float32 waveform  ->  (B, 1, N_MELS, T) log-mel spectrogram."""
    B, C, L = x.shape
    assert C == 1
    assert L - 1 >= PAD + 1, "clip too short for center=True reflect padding"
    x = x.astype(jnp.float32)

    # ---- cheap elementwise prep (fused by XLA into ~one pass over the waveform) -------
    xv = x[:, 0, :]
    if INPUT_NORMALIZATION:
        rms = jnp.sqrt(jnp.mean(xv * xv, axis=-1, keepdims=True))
        xv = xv / (rms + 1e-6)
    y = xv[:, 1:] - PREEMPH * xv[:, :-1]                       # conv1d([-0.97, 1]), (B, L-1)
    yp = jnp.pad(y, ((0, 0), (PAD, PAD)), mode="reflect")      # torch.stft center=True

    T = 1 + (L - 1) // HOP                                     # frames (center=True)
    TM = _choose_tm(T, B)                                      # frames per grid step
    TT = pl.cdiv(T, TM)
    T_pad = TT * TM

    # ---- frame layout (no gather): hop-rows -> width-128 frames -> time-on-lanes ------
    NR = T_pad + 2                                             # hop-rows incl. +1/+2 shifts
    need = NR * HOP
    yp = jnp.pad(yp, ((0, 0), (0, need - yp.shape[1])))        # zero tail only reaches
    Y = yp.reshape(B, NR, HOP)                                 # padded/garbage frames
    frames = jnp.concatenate(
        [Y[:, 0:T_pad, :], Y[:, 1:T_pad + 1, :], Y[:, 2:T_pad + 2, :TAIL]],
        axis=-1)                                               # (B, T_pad, 128)
    FT = jnp.transpose(frames, (0, 2, 1))                      # (B, 128, T_pad), tiny copy

    dftm = jnp.asarray(_build_dft_mat_t())                     # (256, 128) f32
    melb = jnp.asarray(_kaldi_mel_banks(), dtype=jnp.bfloat16)  # (32, 128) bf16

    out = pl.pallas_call(
        melspec_kernel,
        out_shape=jax.ShapeDtypeStruct((B, N_MELS, T_pad), jnp.float32),
        grid_spec=pltpu.PrefetchScalarGridSpec(
            num_scalar_prefetch=0,
            grid=(B, TT),
            in_specs=[
                # frames for this (batch, time-tile)
                pl.BlockSpec((1, N_FFT, TM), lambda b, t: (b, 0, t)),
                # constants: fetched once (block index never changes)
                pl.BlockSpec((2 * N_BINS_PAD, N_FFT), lambda b, t: (0, 0)),
                pl.BlockSpec((N_MELS, N_BINS_PAD), lambda b, t: (0, 0)),
            ],
            out_specs=pl.BlockSpec((1, N_MELS, TM), lambda b, t: (b, 0, t)),
        ),
        compiler_params=pltpu.CompilerParams(
            dimension_semantics=("parallel", "parallel")),
    )(FT, dftm, melb)

    if T_pad != T:
        out = out[:, :, :T]
    # matches PyTorch melspec.unsqueeze(1): (B, 1, N_MELS, T)
    return out[:, None, :, :]


# ----------------------------- pure-JAX reference (independent: uses rfft + gather) ----
def reference(x):
    xv = x[:, 0, :].astype(jnp.float32)
    if INPUT_NORMALIZATION:
        rms = jnp.sqrt(jnp.mean(xv * xv, axis=-1, keepdims=True))
        xv = xv / (rms + 1e-6)
    y = xv[:, 1:] - PREEMPH * xv[:, :-1]
    yp = jnp.pad(y, ((0, 0), (PAD, PAD)), mode="reflect")
    T = 1 + (x.shape[-1] - 1) // HOP
    idx = jnp.arange(T)[:, None] * HOP + jnp.arange(N_FFT)[None, :]
    win = jnp.asarray(_hann_padded(), dtype=jnp.float32)
    frames = yp[:, idx] * win[None, None, :]
    spec = jnp.fft.rfft(frames, n=N_FFT, axis=-1)
    power = jnp.abs(spec).astype(jnp.float32) ** 2                     # (B, T, 65)
    bank = jnp.asarray(_kaldi_mel_banks()[:, :N_BINS])                 # (32, 65)
    mel = power @ bank.T                                               # (B, T, 32)
    out = (jnp.log(mel + 1e-5) + 4.5) / 5.0
    return jnp.transpose(out, (0, 2, 1))[:, None, :, :]


# TODO(synk): training-time random fmin/fmax jitter and torchaudio Frequency/TimeMasking
# (SpecAugment) are skipped — the reference forward disables them when not self.training.

if __name__ == "__main__":
    key = jax.random.PRNGKey(0)

    # small shape: single time tile (T=16 -> TM=128, padded/sliced output)
    B, L = 2, 769
    x = jax.random.normal(key, (B, 1, L), dtype=jnp.float32)
    out = jax.block_until_ready(augment_mel_stft(x))
    ref = jax.block_until_ready(reference(x))
    T = 1 + (L - 1) // HOP
    assert out.shape == (B, 1, N_MELS, T), out.shape
    assert bool(jnp.all(jnp.isfinite(out)))
    np.testing.assert_allclose(np.asarray(out), np.asarray(ref), rtol=2e-2, atol=2e-2)

    # larger shape, B==1: exercises the >=2-grid-step cap (TM=256, TT=2) and tail slicing
    B2, L2 = 1, 12801
    x2 = jax.random.normal(jax.random.PRNGKey(1), (B2, 1, L2), dtype=jnp.float32)
    out2 = jax.block_until_ready(augment_mel_stft(x2))
    ref2 = jax.block_until_ready(reference(x2))
    T2 = 1 + (L2 - 1) // HOP
    assert out2.shape == (B2, 1, N_MELS, T2), out2.shape
    assert bool(jnp.all(jnp.isfinite(out2)))
    np.testing.assert_allclose(np.asarray(out2), np.asarray(ref2), rtol=2e-2, atol=2e-2)

    print("KERNEL_OK")
</pallas_src>

<mosaic_0001>
module attributes {stable_mosaic.version = 11 : i64} {
  func.func @melspec_kernel(%arg0: i32, %arg1: i32, %arg2: memref<1x128x128xf32, #tpu.memory_space<vmem>>, %arg3: memref<256x128xf32, #tpu.memory_space<vmem>>, %arg4: memref<32x128xbf16, #tpu.memory_space<vmem>>, %arg5: memref<1x32x128xf32, #tpu.memory_space<vmem>>) attributes {dimension_semantics = [#tpu.dimension_semantics<parallel>, #tpu.dimension_semantics<parallel>], iteration_bounds = array<i64: 2, 1>, scalar_prefetch = 0 : i64, scratch_operands = 0 : i64, tpu.core_type = #tpu.core_type<tc>, window_params = [{transform_indices = @transform_0, window_bounds = array<i64: 1, 128, 128>}, {pipeline_mode = #tpu.pipeline_mode<synchronous>, transform_indices = @transform_1, window_bounds = array<i64: 256, 128>}, {pipeline_mode = #tpu.pipeline_mode<synchronous>, transform_indices = @transform_2, window_bounds = array<i64: 32, 128>}, {transform_indices = @transform_3, window_bounds = array<i64: 1, 32, 128>}]} {
    %c0 = arith.constant 0 : index
    %c0_0 = arith.constant 0 : index
    %c0_1 = arith.constant 0 : index
    %0 = vector.load %arg2[%c0, %c0_0, %c0_1] : memref<1x128x128xf32, #tpu.memory_space<vmem>>, vector<1x128x128xf32>
    %1 = vector.shape_cast %0 : vector<1x128x128xf32> to vector<128x128xf32>
    %c0_2 = arith.constant 0 : index
    %c0_3 = arith.constant 0 : index
    %2 = vector.load %arg3[%c0_2, %c0_3] : memref<256x128xf32, #tpu.memory_space<vmem>>, vector<256x128xf32>
    %cst = arith.constant dense<0.000000e+00> : vector<256x128xf32>
    %3 = tpu.matmul %2, %1, %cst {dimension_numbers = #tpu.dot_dimension_numbers<[1], [0], [0], [1], [0, 0, 1, 1], [], []>, precision = #tpu.contract_precision<fp32>} : vector<256x128xf32>, vector<128x128xf32>, vector<256x128xf32> -> vector<256x128xf32>
    %4 = vector.extract_strided_slice %3 {offsets = [0, 0], sizes = [128, 128], strides = [1, 1]} : vector<256x128xf32> to vector<128x128xf32>
    %5 = vector.extract_strided_slice %3 {offsets = [128, 0], sizes = [128, 128], strides = [1, 1]} : vector<256x128xf32> to vector<128x128xf32>
    %6 = arith.mulf %4, %4 : vector<128x128xf32>
    %7 = arith.mulf %5, %5 : vector<128x128xf32>
    %8 = arith.addf %6, %7 : vector<128x128xf32>
    %c0_4 = arith.constant 0 : index
    %c0_5 = arith.constant 0 : index
    %9 = vector.load %arg4[%c0_4, %c0_5] : memref<32x128xbf16, #tpu.memory_space<vmem>>, vector<32x128xbf16>
    %10 = arith.truncf %8 : vector<128x128xf32> to vector<128x128xbf16>
    %cst_6 = arith.constant dense<0.000000e+00> : vector<32x128xf32>
    %11 = tpu.matmul %9, %10, %cst_6 {dimension_numbers = #tpu.dot_dimension_numbers<[1], [0], [0], [1], [0, 0, 1, 1], [], []>} : vector<32x128xbf16>, vector<128x128xbf16>, vector<32x128xf32> -> vector<32x128xf32>
    %cst_7 = arith.constant 9.99999974E-6 : f32
    %12 = vector.broadcast %cst_7 : f32 to vector<32x128xf32>
    %13 = arith.addf %11, %12 : vector<32x128xf32>
    %14 = math.log %13 : vector<32x128xf32>
    %cst_8 = arith.constant 4.500000e+00 : f32
    %15 = vector.broadcast %cst_8 : f32 to vector<32x128xf32>
    %16 = arith.addf %14, %15 : vector<32x128xf32>
    %cst_9 = arith.constant 2.000000e-01 : f32
    %17 = vector.broadcast %cst_9 : f32 to vector<32x128xf32>
    %18 = arith.mulf %16, %17 : vector<32x128xf32>
    %c0_10 = arith.constant 0 : index
    %c0_11 = arith.constant 0 : index
    %c0_12 = arith.constant 0 : index
    %19 = vector.load %arg5[%c0_10, %c0_11, %c0_12] : memref<1x32x128xf32, #tpu.memory_space<vmem>>, vector<1x32x128xf32>
    %20 = vector.shape_cast %19 : vector<1x32x128xf32> to vector<32x128xf32>
    %21 = vector.shape_cast %18 : vector<32x128xf32> to vector<1x32x128xf32>
    tpu.vector_store %arg5[%c0_10, %c0_11, %c0_12], %21 {strides = array<i32>} : memref<1x32x128xf32, #tpu.memory_space<vmem>>, vector<1x32x128xf32>,
    return
  }
  func.func @transform_0(%arg0: i32, %arg1: i32) -> (i32, i32, i32) {
    %c0_i32 = arith.constant 0 : i32
    %c0_i32_0 = arith.constant 0 : i32
    return %arg0, %c0_i32, %arg1 : i32, i32, i32
  }
  func.func @transform_1(%arg0: i32, %arg1: i32) -> (i32, i32) {
    %c0_i32 = arith.constant 0 : i32
    %c0_i32_0 = arith.constant 0 : i32
    %c0_i32_1 = arith.constant 0 : i32
    return %c0_i32, %c0_i32_0 : i32, i32
  }
  func.func @transform_2(%arg0: i32, %arg1: i32) -> (i32, i32) {
    %c0_i32 = arith.constant 0 : i32
    %c0_i32_0 = arith.constant 0 : i32
    %c0_i32_1 = arith.constant 0 : i32
    return %c0_i32, %c0_i32_0 : i32, i32
  }
  func.func @transform_3(%arg0: i32, %arg1: i32) -> (i32, i32, i32) {
    %c0_i32 = arith.constant 0 : i32
    %c0_i32_0 = arith.constant 0 : i32
    return %arg0, %c0_i32, %arg1 : i32, i32, i32
  }
}

</mosaic_0001>

<bundles_post_ra>
// kernel: tpu_custom_call.1
= control target key start
LH: loop header
LB: loop body
LE: loop exit
PB: predicated region body
PF: predicated region fallthrough
CT: control target
= control target key end

     0   :  { %8 = vsyncpa [#allocation3], 0  ;;  %s4916_s0 = inlined_call_operand.hbm [shape: f32[2,128,128], index: 0, kind: input, shape index: {}]   ;;  %s4917_s1 = inlined_call_operand.hbm [shape: f32[256,128], index: 1, kind: input, shape index: {}]   ;;  %s4918_s2 = inlined_call_operand.hbm [shape: bf16[32,128], index: 2, kind: input, shape index: {}]   ;;  %s4919_s3 = inlined_call_operand.hbm [shape: f32[2,32,128], index: 3, kind: output, shape index: {}]  }
   0x1   :  { %10 = vsyncpa [#allocation3 + $0x1], 0 }
   0x2   :  { %11 = vsyncpa [#allocation6], 0 }
   0x3   :  { %12 = vsyncpa [#allocation4], 0 }
   0x4   :  { %14 = vsyncpa [#allocation4 + $0x1], 0  ;;  %s3634_s12 = smov 0   ;;  %s3636_s13 = smov 0  }
   0x5   :  { %s3638_s14 = smov 0   ;;  %s3640_s15 = smov 0  }
   0x6   :  { %s3642_s16 = smov 0   ;;  %s3644_s17 = smov 0  }
   0x7 LB: > { %s2518_s18 = sadd.s32 4294967295, %s3602_s17   ;;  %s2519_s19 = sadd.s32 4294967294, %s3602_s17   ;;  %s3602_s17 = sphi %s3644_s17, %s20_s17   ;;  %s3598_s16 = sphi %s3642_s16, %s5226_s16   ;;  %s3594_s15 = sphi %s3640_s15, %s5225_s15   ;;  %s3590_s14 = sphi %s3638_s14, %s5224_s14   ;;  %s3586_s13 = sphi %s3636_s13, %s5223_s13   ;;  %s3582_s12 = sphi %s3634_s12, %s5222_s12  }
   0x8   : > { %p54_p0 = scmp.ne.s32.totalorder %s3586_s13, %s3582_s12  ;;  %p3668_p1 = scmp.eq.s32.totalorder %s2518_s18, 0 }
   0x9   : > { %p3672_p2 = scmp.eq.s32.totalorder %s2518_s18, 1  ;;  %p128_p3 = scmp.eq.s32.totalorder %s2519_s19, 1 }
   0xa   : > { %p3678_p4 = por %p3668_p1, %p54_p0  ;;  %p2520_p5 = scmp.ge.s32.totalorder %s3602_s17, 1 }
   0xb   : > { %p3683_p6 = por %p128_p3, %p54_p0  ;;  %p135_p7 = scmp.lt.s32.totalorder %s3602_s17, 3 }
   0xc   : > { %s3604_s25 = smov [#allocation5]   ;;  %s3605_s28 = smov [#allocation7]  }
   0xd   : > { %s5034_s23 = scalar_select %p3683_p6, 1, 0 }
   0xe   : > { %p3688_p8 = pnand %p2520_p5, %p135_p7  ;;  %s147_s26 = sshll.u32 %s3604_s25, 4  ;;  %s148_s26 = int_to_ptr.vmem [resolvable:$true] %s147_s26 }
   0xf   : > { %s160_s29 = sshll.u32 %s3605_s28, 4  ;;  %s3449_s30 = scalar_lea.vmem %s148_s26, 4096  ;;  %s161_s29 = int_to_ptr.vmem [resolvable:$true] %s160_s29 }
  0x10   : > { %p3351_p9 = pneg %p3688_p8  ;;  %p3450_p13 = scmp.ne.s32.totalorder %s148_s26, %s3449_s30 }
  0x11   : > { %p3457_p5 = scmp.lt.s32.totalorder %s148_s26, %s148_s26  ;;  %p3458_p7 = scmp.lt.s32.totalorder %s3449_s30, %s3449_s30 }
  0x12   : > { %p3697_p11 = pnand %p3351_p9, %p3668_p1 }
  0x13   : > { %p3459_p10 = por %p3458_p7, %p3457_p5 }
  0x14   : > { %p3440_p12 = pneg %p3697_p11 }
  0x16   : > { %p3452_p0 = pnand %p3450_p13, %p3440_p12 }
  0x18   : > { %p3453_p3 = pneg %p3452_p0 }
  0x1a   : > { %p3460_p9 = pnand %p3459_p10, %p3453_p3 }
  0x1c   : > { %3463 = shalt.err (!%p3460_p9)
}
  0x1d   : > { %s4920_s4 = smov 128   ;;  %s3607_s5 = smov 8  }
  0x1e   : > { %3354 = dma.hbm_to_vmem [thread:$0]  (!%p3697_p11), %s4917_s1, 4096, %s148_s26, [#allocation6], %s4920_s4, %s4920_s4, %s3607_s5  }
  0x1f   : > { %s3475_s8 = scalar_lea.vmem %s161_s29, 256  ;;  %p3483_p10 = scmp.lt.s32.totalorder %s161_s29, %s161_s29 }
  0x20   : > { %p3476_p13 = scmp.ne.s32.totalorder %s161_s29, %s3475_s8  ;;  %p3484_p3 = scmp.lt.s32.totalorder %s3475_s8, %s3475_s8 }
  0x22   : > { %p3478_p0 = pnand %p3476_p13, %p3440_p12  ;;  %p3485_p7 = por %p3484_p3, %p3483_p10 }
  0x24   : > { %p3479_p5 = pneg %p3478_p0 }
  0x26   : > { %p3486_p9 = pnand %p3485_p7, %p3479_p5 }
  0x28   : > { %3489 = shalt.err (!%p3486_p9)
}
  0x29   : > { %s3608_s9 = smov 64   ;;  %s3609_s10 = smov 4  }
  0x2a   : > { %3357 = dma.hbm_to_vmem [thread:$0]  (!%p3697_p11), %s4918_s2, 256, %s161_s29, [#allocation6], %s3608_s9, %s3608_s9, %s3609_s10  }
  0x2b   : > { %s32_s19 = sadd.s32 1, %s3598_s16  ;;  %s41_s25 = sadd.s32 1, %s3590_s14 }
  0x2c   : > { %p34_p12 = scmp.ge.s32.totalorder %s32_s19, 2  ;;  %p48_p13 = scmp.ne.s32.totalorder %s3590_s14, %s3586_s13 }
  0x2d   : > { %p49_p0 = scmp.eq.s32.totalorder %s3602_s17, 0  ;;  %p3368_p5 = scmp.lt.s32.totalorder %s3602_s17, 2 }
  0x2e   : > { %s5228_s19 = smov (%p34_p12, %s32_s19), 0  ;;  %p3732_p3 = por %p3672_p2, %p48_p13 }
  0x2f   : > { %p50_p10 = por %p49_p0, %p48_p13  ;;  %s36_s27 = ssub.s32 %s3598_s16, %s5228_s19 }
  0x30   : > { %s174_s28 = sand.u32 1, %s3590_s14   ;;  %p39_p7 = scmp.eq.s32.totalorder %s36_s27, 0 }
  0x31   : > { %s2524_s29 = sshll.u32 %s174_s28, 7  ;;  %s2539_s30 = sshll.u32 %s3598_s16, 11 }
  0x32   : > { %s3741_s6 = scalar_select %p39_p7, %s3590_s14, %s41_s25  }
  0x33   : > { %s185_s9 = scalar_lea.hbm %s4916_s0, %s2539_s30  ;;  %s178_s10 = scalar_lea.vmem [#allocation2], %s2524_s29 }
  0x34   : > { %s186_s11 = sshll.u32 %s178_s10, 4  ;;  %p3748_p11 = pnand %p3368_p5, %p50_p10  ;;  %s187_s11 = int_to_ptr.vmem [resolvable:$true] %s186_s11 }
  0x35   : > { %s175_s18 = scalar_lea.sflag [#allocation3], %s174_s28  ;;  %s3503_s27 = scalar_lea.vmem %s187_s11, 2048 }
  0x36   : > { %p3492_p2 = pneg %p3748_p11  ;;  %p3504_p9 = scmp.ne.s32.totalorder %s187_s11, %s3503_s27 }
  0x37   : > { %s3610_s25 = smov [#allocation2]  }
  0x38   : > { %p3506_p12 = pnand %p3504_p9, %p3492_p2  ;;  %s3508_s4 = sshll.u32 %s3610_s25, 4  ;;  %s3509_s4 = int_to_ptr.vmem [resolvable:$false] %s3508_s4 }
  0x39   : > { %s3510_s30 = scalar_lea.vmem %s3509_s4, 4096  ;;  %p3511_p0 = scmp.lt.s32.totalorder %s187_s11, %s3509_s4 }
  0x3a   : > { %p3507_p13 = pneg %p3506_p12  ;;  %p3512_p7 = scmp.lt.s32.totalorder %s3510_s30, %s3503_s27 }
  0x3c   : > { %p3513_p6 = por %p3512_p7, %p3511_p0 }
  0x3e   : > { %p3514_p5 = pnand %p3513_p6, %p3507_p13 }
  0x40   : > { %3517 = shalt.err (!%p3514_p5)
}
  0x41   : > { %s5039_s29 = smov 128   ;;  %198 = sbr.rel (%p3688_p8) target bundleno = 778 (0x30a), region = 32 }
  0x42   : > { %3361 = dma.hbm_to_vmem [thread:$0]  (!%p3748_p11), %s185_s9, 2048, %s187_s11, %s175_s18, %s5039_s29, %s5039_s29, %s3607_s5  }
  0x46   : > { %s3762_s28 = sand.u32 1, %s3586_s13  }
  0x47   : > { %s2528_s4 = sshll.u32 %s3762_s28, 7  ;;  %s201_s7 = scalar_lea.sflag [#allocation3], %s3762_s28 }
  0x48   : > { %s3766_s8 = scalar_lea.vmem [#allocation2], %s2528_s4 }
  0x49   : > { %3569 = dma.done.wait (%p3678_p4), %s201_s7, 2048  }
  0x4a   : > { %3571 = vsyncadd (%p3678_p4), %s201_s7, 4294965248 }
  0x4b   : > { %3573 = dma.done.wait (%p3668_p1), [#allocation6], 4352  }
  0x4c   : > { %3575 = vsyncadd (%p3668_p1), [#allocation6], 4294962944  ;;  %v251_v0 = vld [vmem:[%s3766_s8 + $0x78] sm:$0xff]  ;;  %v250_v1 = vld [vmem:[%s3766_s8 + $0x70] sm:$0xff]  ;;  %s2531_s20 = sshll.u32 %s3762_s28, 5  ;;  %s2540_s5 = sshll.u32 %s3594_s15, 9 }
  0x4d   : > { %v249_v2 = vld [vmem:[%s3766_s8 + $0x68] sm:$0xff]  ;;  %v3779_v3 = vand.u32 4294901760, %v251_v0  ;;  %v3781_v4 = vand.u32 4294901760, %v250_v1  ;;  %v248_v6 = vld [vmem:[%s3766_s8 + $0x60] sm:$0xff]  ;;  %v247_v7 = vld [vmem:[%s3766_s8 + $0x58] sm:$0xff]  ;;  %s234_s22 = scalar_lea.vmem [#allocation8], %s2531_s20  ;;  %s4868_s11 = scalar_lea.hbm %s4919_s3, %s2540_s5 }
  0x4e   : > { %v3783_v5 = vand.u32 4294901760, %v249_v2  ;;  %v246_v8 = vld [vmem:[%s3766_s8 + $0x50] sm:$0xff]  ;;  %v3788_v9 = vand.u32 4294901760, %v248_v6  ;;  %v3790_v10 = vand.u32 4294901760, %v247_v7  ;;  %v245_v12 = vld [vmem:[%s3766_s8 + $0x48] sm:$0xff]  ;;  %v244_v13 = vld [vmem:[%s3766_s8 + $0x40] sm:$0xff] }
  0x4f   : > { %v3792_v11 = vand.u32 4294901760, %v246_v8  ;;  %2839 = vmatprep.subr.mxu0 %v3779_v3  ;;  %v3798_v14 = vsub.f32 %v251_v0, %v3779_v3  ;;  %v3801_v15 = vsub.f32 %v250_v1, %v3781_v4  ;;  %v3803_v16 = vand.u32 4294901760, %v245_v12  ;;  %v243_v18 = vld [vmem:[%s3766_s8 + $0x38] sm:$0xff]  ;;  %v242_v25 = vld [vmem:[%s3766_s8 + $0x30] sm:$0xff]  ;;  %v241_v35 = vld [vmem:[%s3766_s8 + $0x28] sm:$0xff]  ;;  %s2414_s24 = sshll.u32 %s234_s22, 4  ;;  %s4863_s24 = int_to_ptr.vmem [resolvable:$true] %s2414_s24 }
  0x50   : > { %v3806_v17 = vsub.f32 %v249_v2, %v3783_v5  ;;  %2840 = vmatpush3.msra.mxu0 %v3779_v3  ;;  %v3811_v19 = vsub.f32 %v248_v6, %v3788_v9  ;;  %v3814_v20 = vsub.f32 %v247_v7, %v3790_v10  ;;  %v3826_v24 = vand.u32 4294901760, %v244_v13  ;;  %v240_v40 = vld [vmem:[%s3766_s8 + $0x20] sm:$0xff]  ;;  %v239_v41 = vld [vmem:[%s3766_s8 + $0x18] sm:$0xff]  ;;  %v253_v52 = vld [vmem:[#allocation5 + $0x8] sm:$0xff]  ;;  %s2400_s21 = scalar_lea.sflag [#allocation4], %s3762_s28  ;;  %s3518_s18 = scalar_lea.vmem %s4863_s24, 512 }
  0x51   : > { %2841 = vmatprep.subr.mxu0 %v3781_v4  ;;  %v3818_v21 = vand.u32 4294901760, %v3798_v14  ;;  %v3821_v22 = vand.u32 4294901760, %v3801_v15  ;;  %v3833_v27 = vand.u32 4294901760, %v243_v18  ;;  %v3839_v29 = vsub.f32 %v246_v8, %v3792_v11  ;;  %v252_v48 = vld [vmem:[#allocation5] sm:$0xff]  ;;  %v238_v57 = vld [vmem:[%s3766_s8 + $0x10] sm:$0xff]  ;;  %v237_v61 = vld [vmem:[%s3766_s8 + $0x8] sm:$0xff]  ;;  %p3519_p1 = scmp.ne.s32.totalorder %s4863_s24, %s3518_s18 }
  0x52   : > { %v3824_v23 = vand.u32 4294901760, %v3806_v17  ;;  %2842 = vmatpush3.msra.mxu0 %v3781_v4  ;;  %v3831_v26 = vand.u32 4294901760, %v3811_v19  ;;  %v3836_v28 = vand.u32 4294901760, %v3814_v20  ;;  %v3849_v33 = vsub.f32 %v245_v12, %v3803_v16  ;;  %v254_v6 = vld [vmem:[#allocation5 + $0x10] sm:$0xff]  ;;  %v255_v7 = vld [vmem:[#allocation5 + $0x18] sm:$0xff]  ;;  %s3611_s15 = smov [#allocation8]  }
  0x53   : > { %5040 = vst [vmem:[#allocation12_spill] sm:$0xff] %v3818_v21  ;;  %5041 = vst [vmem:[#allocation13_spill] sm:$0xff] %v3821_v22  ;;  %2843 = vmatprep.subr.mxu0 %v3783_v5  ;;  %v689_v30 = vsub.f32 %v3798_v14, %v3818_v21  ;;  %v696_v31 = vsub.f32 %v3801_v15, %v3821_v22  ;;  %v3852_v34 = vand.u32 4294901760, %v242_v25  ;;  %v3859_v39 = vand.u32 4294901760, %v3839_v29  ;;  %p3520_p4 = pnand %p3519_p1, %p3732_p3  ;;  %s3522_s27 = sshll.u32 %s3611_s15, 4  ;;  %s3523_s27 = int_to_ptr.vmem [resolvable:$false] %s3522_s27 }
  0x54   : > { %5042 = vst [vmem:[#allocation14_spill] sm:$0xff] %v3824_v23  ;;  %5043 = vst [vmem:[#allocation15_spill] sm:$0xff] %v3831_v26  ;;  %v703_v32 = vsub.f32 %v3806_v17, %v3824_v23  ;;  %2844 = vmatpush3.msra.mxu0 %v3783_v5  ;;  %v710_v38 = vsub.f32 %v3811_v19, %v3831_v26  ;;  %v717_v42 = vsub.f32 %v3814_v20, %v3836_v28  ;;  %v260_v23 = vld [vmem:[#allocation5 + $0x40] sm:$0xff]  ;;  %s3524_s25 = scalar_lea.vmem %s3523_s27, 1024  ;;  %p3525_p8 = scmp.lt.s32.totalorder %s4863_s24, %s3523_s27 }
  0x55   : > { %5044 = vst [vmem:[#allocation16_spill] sm:$0xff] %v3836_v28  ;;  %2845 = vmatprep.subr.mxu0 %v3788_v9  ;;  %v690_v36 = vand.u32 4294901760, %v689_v30  ;;  %v697_v37 = vand.u32 4294901760, %v696_v31  ;;  %5045 = vst [vmem:[#allocation17_spill] sm:$0xff] %v3859_v39  ;;  %v3867_v43 = vsub.f32 %v244_v13, %v3826_v24  ;;  %v3870_v45 = vand.u32 4294901760, %v241_v35  ;;  %p3521_p6 = pneg %p3520_p4  ;;  %p3526_p10 = scmp.lt.s32.totalorder %s3524_s25, %s3518_s18 }
  0x56   : > { %2846 = vmatpush3.msra.mxu0 %v3788_v9  ;;  %v704_v44 = vand.u32 4294901760, %v703_v32  ;;  %v3873_v46 = vand.u32 4294901760, %v3849_v33  ;;  %v3876_v47 = vsub.f32 %v243_v18, %v3833_v27  ;;  %v3879_v49 = vand.u32 4294901760, %v240_v40 }
  0x57   : > { %2847 = vmatprep.subr.mxu0 %v3790_v10  ;;  %2919 = vmatprep.subr.mxu1 %v690_v36  ;;  %v3881_v50 = vand.u32 4294901760, %v239_v41  ;;  %v3884_v51 = vsub.f32 %v242_v25, %v3852_v34  ;;  %v711_v53 = vand.u32 4294901760, %v710_v38  ;;  %v724_v54 = vsub.f32 %v3839_v29, %v3859_v39  ;;  %p3527_p11 = por %p3526_p10, %p3525_p8 }
  0x58   : > { %5046 = vst [vmem:[#allocation18_spill] sm:$0xff] %v3873_v46  ;;  %2848 = vmatpush3.msra.mxu0 %v3790_v10  ;;  %2920 = vmatpush3.msra.mxu1 %v690_v36  ;;  %5047 = vst [vmem:[#allocation19_spill] sm:$0xff] %v3879_v49  ;;  %v3890_v55 = vand.u32 4294901760, %v3867_v43  ;;  %v718_v56 = vand.u32 4294901760, %v717_v42  ;;  %v3894_v58 = vand.u32 4294901760, %v252_v48  ;;  %v731_v59 = vsub.f32 %v3849_v33, %v3873_v46  ;;  %v236_v36 = vld [vmem:[%s3766_s8] sm:$0xff] }
  0x59   : > { %5048 = vst [vmem:[#allocation20_spill] sm:$0xff] %v3881_v50  ;;  %2849 = vmatprep.subr.mxu0 %v3792_v11  ;;  %2921 = vmatprep.subr.mxu1 %v697_v37  ;;  %v3900_v60 = vand.u32 4294901760, %v3876_v47  ;;  %v3904_v62 = vsub.f32 %v241_v35, %v3870_v45  ;;  %v3906_v63 = vand.u32 4294901760, %v253_v52  ;;  %v3910_v0 = vand.u32 4294901760, %v3884_v51  ;;  %p3528_p2 = pnand %p3527_p11, %p3521_p6 }
  0x5a   : > { %5049 = vst [vmem:[#allocation21_spill] sm:$0xff] %v3890_v55  ;;  %2850 = vmatpush3.msra.mxu0 %v3792_v11  ;;  %2922 = vmatpush3.msra.mxu1 %v697_v37  ;;  %5050 = vst [vmem:[#allocation22_spill] sm:$0xff] %v3894_v58  ;;  %v3913_v1 = vsub.f32 %v240_v40, %v3879_v49  ;;  %v3916_v2 = vsub.f32 %v239_v41, %v3881_v50  ;;  %v725_v8 = vand.u32 4294901760, %v724_v54 }
  0x5b   : > { %2851 = vmatprep.subr.mxu0 %v3803_v16  ;;  %2923 = vmatprep.subr.mxu1 %v704_v44  ;;  %5051 = vst [vmem:[#allocation23_spill] sm:$0xff] %v3900_v60  ;;  %5052 = vst [vmem:[#allocation24_spill] sm:$0xff] %v3906_v63  ;;  %v738_v12 = vsub.f32 %v3867_v43, %v3890_v55  ;;  %v3921_v13 = vand.u32 4294901760, %v238_v57  ;;  %v3924_v18 = vsub.f32 %v252_v48, %v3894_v58 }
  0x5c   : > { %2852 = vmatpush3.msra.mxu0 %v3803_v16  ;;  %2924 = vmatpush3.msra.mxu1 %v704_v44  ;;  %5053 = vst [vmem:[#allocation25_spill] sm:$0xff] %v3910_v0  ;;  %v3927_v25 = vand.u32 4294901760, %v237_v61  ;;  %v3930_v30 = vsub.f32 %v253_v52, %v3906_v63  ;;  %v732_v31 = vand.u32 4294901760, %v731_v59  ;;  %v745_v32 = vsub.f32 %v3876_v47, %v3900_v60  ;;  %v256_v44 = vld [vmem:[#allocation5 + $0x20] sm:$0xff]  ;;  %v258_v52 = vld [vmem:[#allocation5 + $0x30] sm:$0xff] }
  0x5d   : > { %2853 = vmatprep.subr.mxu0 %v3826_v24  ;;  %2925 = vmatprep.subr.mxu1 %v711_v53  ;;  %5054 = vst [vmem:[#allocation26_spill] sm:$0xff] %v3921_v13  ;;  %5055 = vst [vmem:[#allocation27_spill] sm:$0xff] %v3924_v18  ;;  %v3936_v35 = vand.u32 4294901760, %v3904_v62  ;;  %v3939_v37 = vand.u32 4294901760, %v254_v6  ;;  %v752_v38 = vsub.f32 %v3884_v51, %v3910_v0  ;;  %v3945_v40 = vand.u32 4294901760, %v3913_v1 }
  0x5e   : > { %2854 = vmatpush3.msra.mxu0 %v3826_v24  ;;  %2926 = vmatpush3.msra.mxu1 %v711_v53  ;;  %5056 = vst [vmem:[#allocation28_spill] sm:$0xff] %v3927_v25  ;;  %5057 = vst [vmem:[#allocation29_spill] sm:$0xff] %v3930_v30  ;;  %v3948_v41 = vand.u32 4294901760, %v3916_v2  ;;  %v3950_v42 = vand.u32 4294901760, %v255_v7  ;;  %v739_v48 = vand.u32 4294901760, %v738_v12  ;;  %v3955_v53 = vsub.f32 %v238_v57, %v3921_v13 }
  0x5f   : > { %2855 = vmatprep.subr.mxu0 %v3833_v27  ;;  %2927 = vmatprep.subr.mxu1 %v718_v56  ;;  %5058 = vst [vmem:[#allocation30_spill] sm:$0xff] %v3936_v35  ;;  %5059 = vst [vmem:[#allocation31_spill] sm:$0xff] %v3939_v37  ;;  %v3958_v54 = vsub.f32 %v254_v6, %v3939_v37  ;;  %v3961_v59 = vand.u32 4294901760, %v236_v36  ;;  %v3968_v12 = vsub.f32 %v237_v61, %v3927_v25 }
  0x60   : > { %2856 = vmatpush3.msra.mxu0 %v3833_v27  ;;  %2928 = vmatpush3.msra.mxu1 %v718_v56  ;;  %5060 = vst [vmem:[#allocation32_spill] sm:$0xff] %v3945_v40  ;;  %5061 = vst [vmem:[#allocation33_spill] sm:$0xff] %v3948_v41  ;;  %v257_v56 = vld [vmem:[#allocation5 + $0x28] sm:$0xff]  ;;  %v3965_v60 = vsub.f32 %v255_v7, %v3950_v42  ;;  %v746_v57 = vand.u32 4294901760, %v745_v32  ;;  %v759_v6 = vsub.f32 %v3904_v62, %v3936_v35  ;;  %v259_v32 = vld [vmem:[#allocation5 + $0x38] sm:$0xff] }
  0x61   : > { %5062 = vst [vmem:[#allocation34_spill] sm:$0xff] %v3950_v42  ;;  %2857 = vmatprep.subr.mxu0 %v3852_v34  ;;  %2929 = vmatprep.subr.mxu1 %v725_v8  ;;  %5063 = vst [vmem:[#allocation35_spill] sm:$0xff] %v3958_v54  ;;  %v3974_v55 = vand.u32 4294901760, %v256_v44  ;;  %v753_v7 = vand.u32 4294901760, %v752_v38  ;;  %v766_v61 = vsub.f32 %v3913_v1, %v3945_v40  ;;  %v3981_v46 = vand.u32 4294901760, %v257_v56 }
  0x62   : > { %2858 = vmatpush3.msra.mxu0 %v3852_v34  ;;  %2930 = vmatpush3.msra.mxu1 %v725_v8  ;;  %5064 = vst [vmem:[#allocation36_spill] sm:$0xff] %v3961_v59  ;;  %5065 = vst [vmem:[#allocation37_spill] sm:$0xff] %v3965_v60  ;;  %v773_v0 = vsub.f32 %v3916_v2, %v3948_v41  ;;  %v5069_v8 = vand.u32 4294901760, %v3924_v18  ;;  %v3988_v39 = vand.u32 4294901760, %v3955_v53  ;;  %v3993_v38 = vand.u32 4294901760, %v258_v52 }
  0x63   : > { %5066 = vst [vmem:[#allocation38_spill] sm:$0xff] %v3968_v12  ;;  %2859 = vmatprep.subr.mxu0 %v3870_v45  ;;  %2931 = vmatprep.subr.mxu1 %v732_v31  ;;  %5067 = vst [vmem:[#allocation39_spill] sm:$0xff] %v3974_v55  ;;  %v5073_v41 = vand.u32 4294901760, %v3930_v30  ;;  %v4001_v26 = vand.u32 4294901760, %v3968_v12  ;;  %v5075_v22 = vand.u32 4294901760, %v3958_v54  ;;  %v4011_v21 = vsub.f32 %v257_v56, %v3981_v46 }
  0x64   : > { %2860 = vmatpush3.msra.mxu0 %v3870_v45  ;;  %2932 = vmatpush3.msra.mxu1 %v732_v31  ;;  %5068 = vst [vmem:[#allocation40_spill] sm:$0xff] %v3981_v46  ;;  %v368_v35 = vsub.f32 %v3924_v18, %v5069_v8  ;;  %5070 = vst [vmem:[#allocation41_spill] sm:$0xff] %v3988_v39  ;;  %v3991_v31 = vsub.f32 %v256_v44, %v3974_v55  ;;  %v760_v44 = vand.u32 4294901760, %v759_v6  ;;  %v261_v18 = vld [vmem:[#allocation5 + $0x48] sm:$0xff] }
  0x65   : > { %2861 = vmatprep.subr.mxu0 %v3879_v49  ;;  %2933 = vmatprep.subr.mxu1 %v739_v48  ;;  %5072 = vst [vmem:[#allocation43_spill] sm:$0xff] %v3993_v38  ;;  %v378_v40 = vsub.f32 %v3930_v30, %v5073_v41  ;;  %5074 = vst [vmem:[#allocation44_spill] sm:$0xff] %v4001_v26  ;;  %v4004_v8 = vsub.f32 %v236_v36, %v3961_v59  ;;  %v4013_v41 = vand.u32 4294901760, %v259_v32 }
  0x66   : > { %5071 = vst [vmem:[#allocation42_spill] sm:$0xff] %v3991_v31  ;;  %2862 = vmatpush3.msra.mxu0 %v3879_v49  ;;  %2934 = vmatpush3.msra.mxu1 %v739_v48  ;;  %v388_v48 = vsub.f32 %v3958_v54, %v5075_v22  ;;  %v767_v28 = vand.u32 4294901760, %v766_v61  ;;  %v4018_v30 = vsub.f32 %v258_v52, %v3993_v38  ;;  %v369_v6 = vand.u32 4294901760, %v368_v35  ;;  %v262_v49 = vld [vmem:[#allocation5 + $0x50] sm:$0xff] }
  0x67   : > { %2863 = vmatprep.subr.mxu0 %v3881_v50  ;;  %2935 = vmatprep.subr.mxu1 %v746_v57  ;;  %5076 = vst [vmem:[#allocation45_spill] sm:$0xff] %v4013_v41  ;;  %v774_v22 = vand.u32 4294901760, %v773_v0  ;;  %v780_v56 = vsub.f32 %v3955_v53, %v3988_v39  ;;  %v4023_v54 = vand.u32 4294901760, %v260_v23  ;;  %v5079_v61 = vand.u32 4294901760, %v3965_v60  ;;  %v264_v39 = vld [vmem:[#allocation5 + $0x60] sm:$0xff] }
  0x68   : > { %2864 = vmatpush3.msra.mxu0 %v3881_v50  ;;  %2936 = vmatpush3.msra.mxu1 %v746_v57  ;;  %5077 = vst [vmem:[#allocation46_spill] sm:$0xff] %v4018_v30  ;;  %v379_v57 = vand.u32 4294901760, %v378_v40  ;;  %v787_v36 = vsub.f32 %v3968_v12, %v4001_v26  ;;  %v4032_v35 = vand.u32 4294901760, %v4004_v8  ;;  %v389_v0 = vand.u32 4294901760, %v388_v48 }
  0x69   : > { %2865 = vmatprep.subr.mxu0 %v3921_v13  ;;  %2937 = vmatprep.subr.mxu1 %v753_v7  ;;  %5078 = vst [vmem:[#allocation47_spill] sm:$0xff] %v4023_v54  ;;  %v398_v52 = vsub.f32 %v3965_v60, %v5079_v61  ;;  %v4039_v40 = vand.u32 4294901760, %v261_v18  ;;  %v5082_v61 = vand.u32 4294901760, %v3991_v31  ;;  %v4047_v50 = vsub.f32 %v260_v23, %v4023_v54 }
  0x6a   : > { %2866 = vmatpush3.msra.mxu0 %v3921_v13  ;;  %2938 = vmatpush3.msra.mxu1 %v753_v7  ;;  %5080 = vst [vmem:[#allocation48_spill] sm:$0xff] %v4032_v35  ;;  %v4037_v13 = vsub.f32 %v259_v32, %v4013_v41  ;;  %v263_v7 = vld [vmem:[#allocation5 + $0x58] sm:$0xff]  ;;  %v4049_v48 = vand.u32 4294901760, %v262_v49  ;;  %v781_v32 = vand.u32 4294901760, %v780_v56  ;;  %v5085_v23 = vand.u32 4294901760, %v4011_v21 }
  0x6b   : > { %2867 = vmatprep.subr.mxu0 %v3927_v25  ;;  %2939 = vmatprep.subr.mxu1 %v760_v44  ;;  %5081 = vst [vmem:[#allocation49_spill] sm:$0xff] %v4039_v40  ;;  %v408_v26 = vsub.f32 %v3991_v31, %v5082_v61  ;;  %v794_v61 = vsub.f32 %v4004_v8, %v4032_v35  ;;  %v4055_v31 = vand.u32 4294901760, %v263_v7 }
  0x6c   : > { %2868 = vmatpush3.msra.mxu0 %v3927_v25  ;;  %2940 = vmatpush3.msra.mxu1 %v760_v44  ;;  %5083 = vst [vmem:[#allocation50_spill] sm:$0xff] %v4049_v48  ;;  %v399_v44 = vand.u32 4294901760, %v398_v52  ;;  %v788_v25 = vand.u32 4294901760, %v787_v36  ;;  %v418_v60 = vsub.f32 %v4011_v21, %v5085_v23  ;;  %v4062_v56 = vsub.f32 %v261_v18, %v4039_v40  ;;  %v266_v18 = vld [vmem:[#allocation5 + $0x70] sm:$0xff] }
  0x6d   : > { %2869 = vmatprep.subr.mxu0 %v3961_v59  ;;  %2941 = vmatprep.subr.mxu1 %v767_v28  ;;  %5084 = vst [vmem:[#allocation51_spill] sm:$0xff] %v4055_v31  ;;  %v409_v36 = vand.u32 4294901760, %v408_v26  ;;  %v5087_v52 = vand.u32 4294901760, %v4018_v30  ;;  %v4071_v35 = vsub.f32 %v262_v49, %v4049_v48  ;;  %v795_v23 = vand.u32 4294901760, %v794_v61 }
  0x6e   : > { %2870 = vmatpush3.msra.mxu0 %v3961_v59  ;;  %2871 = vmatprep.mubr.f32.mxu0 %v369_v6  ;;  %v4064_v59 = vand.u32 4294901760, %v264_v39  ;;  %v265_v6 = vld [vmem:[#allocation5 + $0x68] sm:$0xff]  ;;  %v4075_v12 = vsub.f32 %v263_v7, %v4055_v31  ;;  %v419_v26 = vand.u32 4294901760, %v418_v60  ;;  %v5091_v61 = vand.u32 4294901760, %v4047_v50  ;;  %v267_v60 = vld [vmem:[#allocation5 + $0x78] sm:$0xff] }
  0x6f   : > { %2942 = vmatpush3.msra.mxu1 %v767_v28  ;;  %2872 = vmatmul.mubr.f32.vlgmr.msra.gmra.mxu0 %v379_v57  ;;  %v428_v28 = vsub.f32 %v4018_v30, %v5087_v52  ;;  %v5089_v52 = vand.u32 4294901760, %v4037_v13  ;;  %v268_v30 = vld [vmem:[#allocation5 + $0x80] sm:$0xff] }
  0x70   : > { %5086 = vst [vmem:[#allocation52_spill] sm:$0xff] %v4064_v59  ;;  %2943 = vmatprep.subr.mxu1 %v774_v22  ;;  %2874 = vmatprep.mubr.f32.mxu0 %v389_v0  ;;  %v4077_v0 = vand.u32 4294901760, %v265_v6  ;;  %v4085_v57 = vsub.f32 %v264_v39, %v4064_v59  ;;  %v4983_v39 = vand.u32 4294901760, %v4075_v12 }
  0x71   : > { %2944 = vmatpush3.msra.mxu1 %v774_v22  ;;  %2951 = vmatprep.mubr.f32.mxu1 %v3894_v58  ;;  %v438_v49 = vsub.f32 %v4037_v13, %v5089_v52  ;;  %v4979_v22 = vand.u32 4294901760, %v4062_v56  ;;  %v429_v7 = vand.u32 4294901760, %v428_v28  ;;  %v448_v58 = vsub.f32 %v4047_v50, %v5091_v61 }
  0x72   : > { %2945 = vmatprep.subr.mxu1 %v781_v32  ;;  %5088 = vst [vmem:[#allocation53_spill] sm:$0xff] %v4077_v0  ;;  %2999 = vmatprep.subr.mxu0 %v3798_v14  ;;  %5090 = vst [vmem:[#allocation54_spill] sm:$0xff] %v4085_v57  ;;  %v4096_v52 = vsub.f32 %v265_v6, %v4077_v0  ;;  %v4103_v61 = vand.u32 4294901760, %v267_v60 }
  0x73   : > { %2946 = vmatpush3.msra.mxu1 %v781_v32  ;;  %2875 = vmatmul.mubr.f32.gmra.mxu0 %v399_v44  ;;  %v4980_v32 = vand.u32 4294901760, %v4071_v35  ;;  %v4091_v44 = vand.u32 4294901760, %v266_v18  ;;  %v458_v28 = vsub.f32 %v4062_v56, %v4979_v22  ;;  %v270_v22 = vld [vmem:[#allocation5 + $0x90] sm:$0xff] }
  0x74   : > { %2947 = vmatprep.subr.mxu1 %v788_v25  ;;  %2877 = vmatprep.mubr.f32.mxu0 %v409_v36  ;;  %5092 = vst [vmem:[#allocation55_spill] sm:$0xff] %v4096_v52  ;;  %v439_v36 = vand.u32 4294901760, %v438_v49  ;;  %5093 = vst [vmem:[#allocation56_spill] sm:$0xff] %v4103_v61  ;;  %v269_v49 = vld [vmem:[#allocation5 + $0x88] sm:$0xff] }
  0x75   : > { %2948 = vmatpush3.msra.mxu1 %v788_v25  ;;  %3000 = vmatpush3.msra.mxu0 %v3798_v14  ;;  %v4986_v25 = vand.u32 4294901760, %v4085_v57  ;;  %v449_v14 = vand.u32 4294901760, %v448_v58  ;;  %v468_v6 = vsub.f32 %v4071_v35, %v4980_v32 }
  0x76   : > { %2949 = vmatprep.subr.mxu1 %v795_v23  ;;  %3001 = vmatprep.subr.mxu0 %v3801_v15 }
  0x77   : > { %2950 = vmatpush3.msra.mxu1 %v795_v23  ;;  %2878 = vmatmul.mubr.f32.gmra.mxu0 %v419_v26  ;;  %v4110_v23 = vsub.f32 %v266_v18, %v4091_v44  ;;  %v4112_v26 = vand.u32 4294901760, %v268_v30  ;;  %v459_v18 = vand.u32 4294901760, %v458_v28  ;;  %v488_v32 = vsub.f32 %v4085_v57, %v4986_v25 }
  0x78   : > { %2952 = vmatmul.mubr.f32.vlgmr.msra.gmra.mxu1 %v3906_v63  ;;  %2880 = vmatprep.mubr.f32.mxu0 %v429_v7  ;;  %v478_v7 = vsub.f32 %v4075_v12, %v4983_v39  ;;  %v469_v39 = vand.u32 4294901760, %v468_v6  ;;  %v4136_v28 = vand.u32 4294901760, %v270_v22  ;;  %v271_v63 = vld [vmem:[#allocation5 + $0x98] sm:$0xff]  ;;  %v5096_v57 = vand.u32 4294901760, %v4096_v52 }
  0x79   : > { %5094 = vst [vmem:[#allocation57_spill] sm:$0xff] %v4112_v26  ;;  %2954 = vmatprep.mubr.f32.mxu1 %v3939_v37  ;;  %3002 = vmatpush3.msra.mxu0 %v3801_v15  ;;  %v4126_v37 = vsub.f32 %v267_v60, %v4103_v61  ;;  %v4128_v15 = vand.u32 4294901760, %v269_v49  ;;  %v272_v60 = vld [vmem:[#allocation5 + $0xa0] sm:$0xff]  ;;  %v4149_v58 = vand.u32 4294901760, %v271_v63 }
  0x7a   : > { %3003 = vmatprep.subr.mxu0 %v3806_v17  ;;  %3079 = vmatprep.subr.mxu1 %v3779_v3  ;;  %v479_v25 = vand.u32 4294901760, %v478_v7 }
  0x7b   : > { %2881 = vmatmul.mubr.f32.gmra.mxu0 %v439_v36  ;;  %5095 = vst [vmem:[#allocation58_spill] sm:$0xff] %v4126_v37  ;;  %3080 = vmatpush3.msra.mxu1 %v3779_v3  ;;  %v4134_v36 = vsub.f32 %v268_v30, %v4112_v26  ;;  %v489_v30 = vand.u32 4294901760, %v488_v32  ;;  %v4147_v6 = vsub.f32 %v269_v49, %v4128_v15  ;;  %v274_v49 = vld [vmem:[#allocation5 + $0xb0] sm:$0xff] }
  0x7c   : > { %2955 = vmatmul.mubr.f32.gmra.mxu1 %v3950_v42  ;;  %2883 = vmatprep.mubr.f32.mxu0 %v449_v14  ;;  %v498_v42 = vsub.f32 %v4096_v52, %v5096_v57  ;;  %v5097_v57 = vand.u32 4294901760, %v4110_v23  ;;  %v4158_v32 = vsub.f32 %v270_v22, %v4136_v28  ;;  %v4160_v14 = vand.u32 4294901760, %v272_v60 }
  0x7d   : > { %2957 = vmatprep.mubr.f32.mxu1 %v3974_v55  ;;  %3004 = vmatpush3.msra.mxu0 %v3806_v17  ;;  %v273_v17 = vld [vmem:[#allocation5 + $0xa8] sm:$0xff] }
  0x7e   : > { %3005 = vmatprep.subr.mxu0 %v3811_v19  ;;  %3081 = vmatprep.subr.mxu1 %v3781_v4  ;;  %v508_v7 = vsub.f32 %v4110_v23, %v5097_v57  ;;  %v499_v55 = vand.u32 4294901760, %v498_v42  ;;  %v4164_v52 = vand.u32 4294901760, %v273_v17  ;;  %v4184_v57 = vsub.f32 %v272_v60, %v4160_v14 }
  0x7f   : > { %2884 = vmatmul.mubr.f32.gmra.mxu0 %v459_v18  ;;  %3082 = vmatpush3.msra.mxu1 %v3781_v4  ;;  %v4173_v18 = vsub.f32 %v271_v63, %v4149_v58  ;;  %v276_v63 = vld [vmem:[#allocation5 + $0xc0] sm:$0xff] }
  0x80   : > { %2958 = vmatmul.mubr.f32.gmra.mxu1 %v3981_v46  ;;  %2886 = vmatprep.mubr.f32.mxu0 %v469_v39  ;;  %v5098_v39 = vand.u32 4294901760, %v4126_v37  ;;  %v509_v42 = vand.u32 4294901760, %v508_v7 }
  0x81   : > { %2960 = vmatprep.mubr.f32.mxu1 %v3993_v38  ;;  %3006 = vmatpush3.msra.mxu0 %v3811_v19  ;;  %5099 = vst [vmem:[#allocation59_spill] sm:$0xff] %v4173_v18  ;;  %v4175_v38 = vand.u32 4294901760, %v274_v49  ;;  %v275_v19 = vld [vmem:[#allocation5 + $0xb8] sm:$0xff] }
  0x82   : > { %3007 = vmatprep.subr.mxu0 %v3814_v20  ;;  %3083 = vmatprep.subr.mxu1 %v3783_v5  ;;  %v518_v22 = vsub.f32 %v4126_v37, %v5098_v39  ;;  %v4189_v37 = vsub.f32 %v273_v17, %v4164_v52 }
  0x83   : > { %2887 = vmatmul.mubr.f32.gmra.mxu0 %v479_v25  ;;  %3084 = vmatpush3.msra.mxu1 %v3783_v5  ;;  %v5100_v25 = vand.u32 4294901760, %v4134_v36 }
  0x84   : > { %2961 = vmatmul.mubr.f32.gmra.mxu1 %v4013_v41  ;;  %2889 = vmatprep.mubr.f32.mxu0 %v489_v30  ;;  %5101 = vst [vmem:[#allocation60_spill] sm:$0xff] %v4189_v37  ;;  %v4192_v30 = vand.u32 4294901760, %v275_v19  ;;  %v519_v7 = vand.u32 4294901760, %v518_v22  ;;  %v4208_v41 = vand.u32 4294901760, %v276_v63  ;;  %v280_v22 = vld [vmem:[#allocation5 + $0xe0] sm:$0xff] }
  0x85   : > { %v528_v46 = vsub.f32 %v4134_v36, %v5100_v25  ;;  %2963 = vmatprep.mubr.f32.mxu1 %v4023_v54  ;;  %3008 = vmatpush3.msra.mxu0 %v3814_v20  ;;  %v5102_v25 = vand.u32 4294901760, %v4147_v6  ;;  %v4200_v20 = vsub.f32 %v274_v49, %v4175_v38  ;;  %v5104_v54 = vand.u32 4294901760, %v4158_v32  ;;  %v278_v49 = vld [vmem:[#allocation5 + $0xd0] sm:$0xff] }
  0x86   : > { %3009 = vmatprep.subr.mxu0 %v3839_v29  ;;  %3085 = vmatprep.subr.mxu1 %v3788_v9 }
  0x87   : > { %2890 = vmatmul.mubr.f32.gmra.mxu0 %v499_v55  ;;  %v538_v60 = vsub.f32 %v4147_v6, %v5102_v25  ;;  %5103 = vst [vmem:[#allocation61_spill] sm:$0xff] %v4200_v20  ;;  %3086 = vmatpush3.msra.mxu1 %v3788_v9  ;;  %v529_v17 = vand.u32 4294901760, %v528_v46  ;;  %v548_v55 = vsub.f32 %v4158_v32, %v5104_v54  ;;  %v277_v25 = vld [vmem:[#allocation5 + $0xc8] sm:$0xff]  ;;  %v5105_v54 = vand.u32 4294901760, %v4173_v18 }
  0x88   : > { %2964 = vmatmul.mubr.f32.gmra.mxu1 %v4039_v40  ;;  %2892 = vmatprep.mubr.f32.mxu0 %v509_v42  ;;  %v4214_v40 = vsub.f32 %v275_v19, %v4192_v30  ;;  %v5106_v19 = vand.u32 4294901760, %v4184_v57 }
  0x89   : > { %2966 = vmatprep.mubr.f32.mxu1 %v4049_v48  ;;  %3010 = vmatpush3.msra.mxu0 %v3839_v29  ;;  %v539_v46 = vand.u32 4294901760, %v538_v60  ;;  %v558_v42 = vsub.f32 %v4173_v18, %v5105_v54  ;;  %v4222_v48 = vand.u32 4294901760, %v277_v25  ;;  %v549_v29 = vand.u32 4294901760, %v548_v55  ;;  %v279_v54 = vld [vmem:[#allocation5 + $0xd8] sm:$0xff] }
  0x8a   : > { %3011 = vmatprep.subr.mxu0 %v3849_v33  ;;  %3087 = vmatprep.subr.mxu1 %v3790_v10  ;;  %v568_v39 = vsub.f32 %v4184_v57, %v5106_v19  ;;  %v4232_v60 = vand.u32 4294901760, %v278_v49  ;;  %v5107_v18 = vand.u32 4294901760, %v4189_v37  ;;  %v5108_v19 = vand.u32 4294901760, %v4200_v20 }
  0x8b   : > { %2893 = vmatmul.mubr.f32.gmra.mxu0 %v519_v7  ;;  %3088 = vmatpush3.msra.mxu1 %v3790_v10  ;;  %v4230_v7 = vsub.f32 %v276_v63, %v4208_v41  ;;  %v559_v63 = vand.u32 4294901760, %v558_v42  ;;  %v4256_v42 = vand.u32 4294901760, %v280_v22 }
  0x8c   : > { %2967 = vmatmul.mubr.f32.gmra.mxu1 %v4055_v31  ;;  %2895 = vmatprep.mubr.f32.mxu0 %v529_v17  ;;  %v578_v17 = vsub.f32 %v4189_v37, %v5107_v18  ;;  %v588_v31 = vsub.f32 %v4200_v20, %v5108_v19  ;;  %v569_v18 = vand.u32 4294901760, %v568_v39  ;;  %v281_v37 = vld [vmem:[#allocation5 + $0xe8] sm:$0xff]  ;;  %v5109_v20 = vand.u32 4294901760, %v4214_v40 }
  0x8d   : > { %2969 = vmatprep.mubr.f32.mxu1 %v4064_v59  ;;  %3012 = vmatpush3.msra.mxu0 %v3849_v33  ;;  %v4246_v59 = vsub.f32 %v277_v25, %v4222_v48  ;;  %v4249_v33 = vand.u32 4294901760, %v279_v54  ;;  %v5021_v55 = vand.u32 4294901760, %v4230_v7  ;;  %v282_v25 = vld [vmem:[#allocation5 + $0xf0] sm:$0xff] }
  0x8e   : > { %3013 = vmatprep.subr.mxu0 %v3867_v43  ;;  %3089 = vmatprep.subr.mxu1 %v3792_v11  ;;  %v579_v19 = vand.u32 4294901760, %v578_v17  ;;  %v589_v39 = vand.u32 4294901760, %v588_v31  ;;  %v4278_v31 = vsub.f32 %v280_v22, %v4256_v42 }
  0x8f   : > { %2896 = vmatmul.mubr.f32.gmra.mxu0 %v539_v46  ;;  %3090 = vmatpush3.msra.mxu1 %v3792_v11  ;;  %v4254_v46 = vsub.f32 %v278_v49, %v4232_v60 }
  0x90   : > { %2970 = vmatmul.mubr.f32.gmra.mxu1 %v4077_v0  ;;  %2898 = vmatprep.mubr.f32.mxu0 %v549_v29  ;;  %v598_v0 = vsub.f32 %v4214_v40, %v5109_v20  ;;  %v4267_v29 = vsub.f32 %v279_v54, %v4249_v33  ;;  %v608_v20 = vsub.f32 %v4230_v7, %v5021_v55  ;;  %v283_v54 = vld [vmem:[#allocation5 + $0xf8] sm:$0xff] }
  0x91   : > { %2972 = vmatprep.mubr.f32.mxu1 %v4091_v44  ;;  %3014 = vmatpush3.msra.mxu0 %v3867_v43  ;;  %v4270_v43 = vand.u32 4294901760, %v281_v37 }
  0x92   : > { %3015 = vmatprep.subr.mxu0 %v3876_v47  ;;  %3091 = vmatprep.subr.mxu1 %v3803_v16  ;;  %v599_v49 = vand.u32 4294901760, %v598_v0  ;;  %v5030_v22 = vand.u32 4294901760, %v4267_v29  ;;  %v5111_v0 = vand.u32 4294901760, %v4254_v46 }
  0x93   : > { %2899 = vmatmul.mubr.f32.gmra.mxu0 %v559_v63  ;;  %3092 = vmatpush3.msra.mxu1 %v3803_v16  ;;  %v4280_v63 = vand.u32 4294901760, %v282_v25  ;;  %v4292_v17 = vsub.f32 %v281_v37, %v4270_v43 }
  0x94   : > { %2973 = vmatmul.mubr.f32.gmra.mxu1 %v4103_v61  ;;  %2901 = vmatprep.mubr.f32.mxu0 %v569_v18  ;;  %v5110_v18 = vand.u32 4294901760, %v4246_v59  ;;  %v5029_v61 = vand.u32 4294901760, %v4278_v31 }
  0x95   : > { %2975 = vmatprep.mubr.f32.mxu1 %v4112_v26  ;;  %3016 = vmatpush3.msra.mxu0 %v3876_v47  ;;  %v4294_v26 = vand.u32 4294901760, %v283_v54  ;;  %v609_v47 = vand.u32 4294901760, %v608_v20  ;;  %v5028_v20 = vand.u32 4294901760, %v4292_v17 }
  0x96   : > { %3017 = vmatprep.subr.mxu0 %v3884_v51  ;;  %3093 = vmatprep.subr.mxu1 %v3826_v24  ;;  %v618_v55 = vsub.f32 %v4246_v59, %v5110_v18  ;;  %v4302_v18 = vsub.f32 %v282_v25, %v4280_v63 }
  0x97   : > { %2902 = vmatmul.mubr.f32.gmra.mxu0 %v579_v19  ;;  %3094 = vmatpush3.msra.mxu1 %v3826_v24  ;;  %v628_v19 = vsub.f32 %v4254_v46, %v5111_v0  ;;  %v4314_v25 = vsub.f32 %v283_v54, %v4294_v26 }
  0x98   : > { %2976 = vmatmul.mubr.f32.gmra.mxu1 %v4128_v15  ;;  %2904 = vmatprep.mubr.f32.mxu0 %v589_v39  ;;  %v619_v37 = vand.u32 4294901760, %v618_v55  ;;  %v638_v39 = vsub.f32 %v4267_v29, %v5030_v22  ;;  %v5027_v55 = vand.u32 4294901760, %v4302_v18  ;;  %v5129_v22 = vld [vmem:[#allocation14_spill] sm:$0xff] }
  0x99   : > { %2978 = vmatprep.mubr.f32.mxu1 %v4136_v28  ;;  %3018 = vmatpush3.msra.mxu0 %v3884_v51  ;;  %v629_v51 = vand.u32 4294901760, %v628_v19  ;;  %v5026_v0 = vand.u32 4294901760, %v4314_v25 }
  0x9a   : > { %3019 = vmatprep.subr.mxu0 %v3904_v62  ;;  %3095 = vmatprep.subr.mxu1 %v3833_v27  ;;  %v639_v54 = vand.u32 4294901760, %v638_v39 }
  0x9b   : > { %2905 = vmatmul.mubr.f32.gmra.mxu0 %v599_v49  ;;  %3096 = vmatpush3.msra.mxu1 %v3833_v27  ;;  %v648_v49 = vsub.f32 %v4278_v31, %v5029_v61  ;;  %v678_v39 = vsub.f32 %v4314_v25, %v5026_v0  ;;  %v5125_v0 = vld [vmem:[#allocation13_spill] sm:$0xff] }
  0x9c   : > { %2979 = vmatmul.mubr.f32.gmra.mxu1 %v4149_v58  ;;  %2907 = vmatprep.mubr.f32.mxu0 %v609_v47  ;;  %v658_v47 = vsub.f32 %v4292_v17, %v5028_v20  ;;  %v5127_v20 = vld [vmem:[#allocation46_spill] sm:$0xff] }
  0x9d   : > { %2981 = vmatprep.mubr.f32.mxu1 %v4160_v14  ;;  %3020 = vmatpush3.msra.mxu0 %v3904_v62  ;;  %v649_v19 = vand.u32 4294901760, %v648_v49  ;;  %v668_v62 = vsub.f32 %v4302_v18, %v5027_v55  ;;  %v679_v49 = vand.u32 4294901760, %v678_v39  ;;  %v5120_v39 = vld [vmem:[#allocation12_spill] sm:$0xff] }
  0x9e   : > { %3021 = vmatprep.subr.mxu0 %v3913_v1  ;;  %3097 = vmatprep.subr.mxu1 %v3852_v34 }
  0x9f   : > { %2908 = vmatmul.mubr.f32.gmra.mxu0 %v619_v37  ;;  %3098 = vmatpush3.msra.mxu1 %v3852_v34  ;;  %v659_v37 = vand.u32 4294901760, %v658_v47  ;;  %v5114_v47 = vld [vmem:[#allocation20_spill] sm:$0xff] }
  0xa0   : > { %2982 = vmatmul.mubr.f32.gmra.mxu1 %v4164_v52  ;;  %2910 = vmatprep.mubr.f32.mxu0 %v629_v51  ;;  %v669_v51 = vand.u32 4294901760, %v668_v62  ;;  %v5118_v62 = vld [vmem:[#allocation35_spill] sm:$0xff] }
  0xa1   : > { %2984 = vmatprep.mubr.f32.mxu1 %v4175_v38  ;;  %3022 = vmatpush3.msra.mxu0 %v3913_v1  ;;  %v5112_v1 = vld [vmem:[#allocation19_spill] sm:$0xff]  ;;  %v5128_v61 = vand.u32 4294901760, %v5118_v62 }
  0xa2   : > { %3023 = vmatprep.subr.mxu0 %v3916_v2  ;;  %3099 = vmatprep.subr.mxu1 %v3870_v45 }
  0xa3   : > { %2911 = vmatmul.mubr.f32.gmra.mxu0 %v639_v54  ;;  %3100 = vmatpush3.msra.mxu1 %v3870_v45  ;;  %v5113_v54 = vld [vmem:[#allocation38_spill] sm:$0xff] }
  0xa4   : > { %2985 = vmatmul.mubr.f32.gmra.mxu1 %v4192_v30  ;;  %2913 = vmatprep.mubr.f32.mxu0 %v649_v19  ;;  %v5117_v19 = vld [vmem:[#allocation26_spill] sm:$0xff] }
  0xa5   : > { %2987 = vmatprep.mubr.f32.mxu1 %v4208_v41  ;;  %3024 = vmatpush3.msra.mxu0 %v3916_v2  ;;  %v5115_v2 = vld [vmem:[#allocation27_spill] sm:$0xff] }
  0xa6   : > { %3025 = vmatprep.subr.mxu0 %v3955_v53  ;;  %3101 = vmatprep.subr.mxu1 %v5112_v1 }
  0xa7   : > { %2914 = vmatmul.mubr.f32.gmra.mxu0 %v659_v37  ;;  %3102 = vmatpush3.msra.mxu1 %v5112_v1  ;;  %v5119_v37 = vld [vmem:[#allocation28_spill] sm:$0xff] }
  0xa8   : > { %2988 = vmatmul.mubr.f32.gmra.mxu1 %v4222_v48  ;;  %2916 = vmatprep.mubr.f32.mxu0 %v669_v51  ;;  %v5121_v51 = vld [vmem:[#allocation37_spill] sm:$0xff] }
  0xa9   : > { %2990 = vmatprep.mubr.f32.mxu1 %v4232_v60  ;;  %3026 = vmatpush3.msra.mxu0 %v3955_v53  ;;  %v5116_v53 = vld [vmem:[#allocation29_spill] sm:$0xff] }
  0xaa   : > { %3027 = vmatprep.subr.mxu0 %v5113_v54  ;;  %3103 = vmatprep.subr.mxu1 %v5114_v47  ;;  %v5126_v55 = vand.u32 4294901760, %v5116_v53 }
  0xab   : > { %2917 = vmatmul.mubr.f32.gmra.mxu0 %v679_v49  ;;  %3104 = vmatpush3.msra.mxu1 %v5114_v47  ;;  %v5123_v49 = vld [vmem:[#allocation42_spill] sm:$0xff] }
  0xac   : > { %2991 = vmatmul.mubr.f32.gmra.mxu1 %v4249_v33  ;;  %3028 = vmatpush3.msra.mxu0 %v5113_v54  ;;  %v5124_v54 = vand.u32 4294901760, %v5115_v2 }
  0xad   : > { %3029 = vmatprep.subr.mxu0 %v4004_v8  ;;  %2993 = vmatprep.mubr.f32.mxu1 %v4256_v42 }
  0xae   : > { %3030 = vmatpush3.msra.mxu0 %v4004_v8  ;;  %3031 = vmatprep.mubr.f32.mxu0 %v5115_v2  ;;  %v5122_v8 = vld [vmem:[#allocation36_spill] sm:$0xff]  ;;  %v5130_v2 = vand.u32 4294901760, %v5121_v51 }
  0xaf   : > { %3032 = vmatmul.mubr.f32.vlgmr.msra.gmra.mxu0 %v5116_v53  ;;  %3105 = vmatprep.subr.mxu1 %v5117_v19  ;;  %v5135_v53 = vld [vmem:[#allocation16_spill] sm:$0xff] }
  0xb0   : > { %2994 = vmatmul.mubr.f32.gmra.mxu1 %v4270_v43  ;;  %3034 = vmatprep.mubr.f32.mxu0 %v5118_v62  ;;  %v5140_v62 = vld [vmem:[#allocation55_spill] sm:$0xff] }
  0xb1   : > { %2996 = vmatprep.mubr.f32.mxu1 %v4280_v63  ;;  %3106 = vmatpush3.msra.mxu1 %v5117_v19 }
  0xb2   : > { %3107 = vmatprep.subr.mxu1 %v5119_v37  ;;  %3159 = vmatprep.subr.mxu0 %v5120_v39 }
  0xb3   : > { %3035 = vmatmul.mubr.f32.gmra.mxu0 %v5121_v51  ;;  %3108 = vmatpush3.msra.mxu1 %v5119_v37  ;;  %v5150_v51 = vld [vmem:[#allocation23_spill] sm:$0xff] }
  0xb4   : > { %2997 = vmatmul.mubr.f32.gmra.mxu1 %v4294_v26  ;;  %3109 = vmatprep.subr.mxu1 %v5122_v8 }
  0xb5   : > { %3037 = vmatprep.mubr.f32.mxu0 %v5123_v49  ;;  %3110 = vmatpush3.msra.mxu1 %v5122_v8 }
  0xb6   : > { %3111 = vmatprep.mubr.f32.mxu1 %v5124_v54  ;;  %3160 = vmatpush3.msra.mxu0 %v5120_v39  ;;  %v5144_v39 = vld [vmem:[#allocation58_spill] sm:$0xff]  ;;  %v5153_v54 = vand.u32 4294901760, %v4134_v36 }
  0xb7   : > { %3038 = vmatmul.mubr.f32.gmra.mxu0 %v4011_v21  ;;  %3161 = vmatprep.subr.mxu0 %v5125_v0 }
  0xb8   : > { %3112 = vmatmul.mubr.f32.vlgmr.msra.gmra.mxu1 %v5126_v55  ;;  %3040 = vmatprep.mubr.f32.mxu0 %v5127_v20  ;;  %v5131_v55 = vand.u32 4294901760, %v5123_v49  ;;  %v5151_v49 = vld [vmem:[#allocation59_spill] sm:$0xff] }
  0xb9   : > { %3114 = vmatprep.mubr.f32.mxu1 %v5128_v61  ;;  %3162 = vmatpush3.msra.mxu0 %v5125_v0  ;;  %v5132_v61 = vld [vmem:[#allocation15_spill] sm:$0xff]  ;;  %v5134_v0 = vand.u32 4294901760, %v5127_v20  ;;  %v5139_v20 = vld [vmem:[#allocation17_spill] sm:$0xff] }
  0xba   : > { %3163 = vmatprep.subr.mxu0 %v5129_v22  ;;  %3239 = vmatprep.subr.mxu1 %v3779_v3 }
  0xbb   : > { %3041 = vmatmul.mubr.f32.gmra.mxu0 %v4037_v13  ;;  %3240 = vmatpush3.msra.mxu1 %v3779_v3  ;;  %v5133_v3 = vand.u32 4294901760, %v4011_v21  ;;  %v5137_v21 = vld [vmem:[#allocation54_spill] sm:$0xff] }
  0xbc   : > { %3115 = vmatmul.mubr.f32.gmra.mxu1 %v5130_v2  ;;  %3043 = vmatprep.mubr.f32.mxu0 %v4047_v50  ;;  %v5155_v2 = vld [vmem:[#allocation60_spill] sm:$0xff] }
  0xbd   : > { %3117 = vmatprep.mubr.f32.mxu1 %v5131_v55  ;;  %3164 = vmatpush3.msra.mxu0 %v5129_v22  ;;  %v5138_v22 = vand.u32 4294901760, %v4047_v50  ;;  %v5143_v50 = vld [vmem:[#allocation18_spill] sm:$0xff]  ;;  %v5157_v55 = vld [vmem:[#allocation61_spill] sm:$0xff] }
  0xbe   : > { %3165 = vmatprep.subr.mxu0 %v5132_v61  ;;  %3241 = vmatprep.subr.mxu1 %v3781_v4 }
  0xbf   : > { %3044 = vmatmul.mubr.f32.gmra.mxu0 %v4062_v56  ;;  %3242 = vmatpush3.msra.mxu1 %v3781_v4  ;;  %v5136_v4 = vand.u32 4294901760, %v4037_v13  ;;  %v5142_v13 = vand.u32 4294901760, %v4071_v35 }
  0xc0   : > { %3118 = vmatmul.mubr.f32.gmra.mxu1 %v5133_v3  ;;  %3046 = vmatprep.mubr.f32.mxu0 %v4071_v35  ;;  %v5147_v35 = vld [vmem:[#allocation21_spill] sm:$0xff]  ;;  %v5164_v3 = vand.u32 4294901760, %v5157_v55 }
  0xc1   : > { %3120 = vmatprep.mubr.f32.mxu1 %v5134_v0  ;;  %3166 = vmatpush3.msra.mxu0 %v5132_v61  ;;  %v5158_v61 = vand.u32 4294901760, %v4158_v32  ;;  %v5167_v0 = vand.u32 4294901760, %v4230_v7 }
  0xc2   : > { %3167 = vmatprep.subr.mxu0 %v5135_v53  ;;  %3243 = vmatprep.subr.mxu1 %v3783_v5 }
  0xc3   : > { %3047 = vmatmul.mubr.f32.gmra.mxu0 %v4075_v12  ;;  %3244 = vmatpush3.msra.mxu1 %v3783_v5  ;;  %v5141_v5 = vand.u32 4294901760, %v4062_v56  ;;  %v5146_v56 = vand.u32 4294901760, %v5137_v21 }
  0xc4   : > { %3121 = vmatmul.mubr.f32.gmra.mxu1 %v5136_v4  ;;  %3049 = vmatprep.mubr.f32.mxu0 %v5137_v21  ;;  %v5175_v4 = vld [vmem:[#allocation22_spill] sm:$0xff]  ;;  %v5176_v21 = vld [vmem:[#allocation24_spill] sm:$0xff] }
  0xc5   : > { %3123 = vmatprep.mubr.f32.mxu1 %v5138_v22  ;;  %3168 = vmatpush3.msra.mxu0 %v5135_v53  ;;  %v5168_v53 = vld [vmem:[#allocation41_spill] sm:$0xff]  ;;  %v5179_v22 = vand.u32 4294901760, %v4302_v18 }
  0xc6   : > { %3169 = vmatprep.subr.mxu0 %v5139_v20  ;;  %3245 = vmatprep.subr.mxu1 %v3788_v9 }
  0xc7   : > { %3050 = vmatmul.mubr.f32.gmra.mxu0 %v5140_v62  ;;  %3246 = vmatpush3.msra.mxu1 %v3788_v9  ;;  %v5145_v9 = vand.u32 4294901760, %v4075_v12  ;;  %v5149_v12 = vand.u32 4294901760, %v4110_v23 }
  0xc8   : > { %3124 = vmatmul.mubr.f32.gmra.mxu1 %v5141_v5  ;;  %3052 = vmatprep.mubr.f32.mxu0 %v4110_v23  ;;  %v5154_v23 = vld [vmem:[#allocation25_spill] sm:$0xff]  ;;  %v5189_v5 = vld [vmem:[#allocation51_spill] sm:$0xff] }
  0xc9   : > { %3126 = vmatprep.mubr.f32.mxu1 %v5142_v13  ;;  %3170 = vmatpush3.msra.mxu0 %v5139_v20  ;;  %v5181_v20 = vand.u32 4294901760, %v4314_v25  ;;  %v5190_v13 = vld [vmem:[#allocation52_spill] sm:$0xff] }
  0xca   : > { %3171 = vmatprep.subr.mxu0 %v5143_v50  ;;  %3247 = vmatprep.subr.mxu1 %v3790_v10 }
  0xcb   : > { %3053 = vmatmul.mubr.f32.gmra.mxu0 %v5144_v39  ;;  %3248 = vmatpush3.msra.mxu1 %v3790_v10  ;;  %v5148_v10 = vand.u32 4294901760, %v5140_v62  ;;  %v5187_v62 = vld [vmem:[#allocation49_spill] sm:$0xff] }
  0xcc   : > { %3127 = vmatmul.mubr.f32.gmra.mxu1 %v5145_v9  ;;  %3055 = vmatprep.mubr.f32.mxu0 %v4134_v36  ;;  %v5159_v36 = vld [vmem:[#allocation30_spill] sm:$0xff]  ;;  %v5193_v9 = vld [vmem:[#allocation57_spill] sm:$0xff] }
  0xcd   : > { %3129 = vmatprep.mubr.f32.mxu1 %v5146_v56  ;;  %3172 = vmatpush3.msra.mxu0 %v5143_v50  ;;  %v5191_v50 = vld [vmem:[#allocation53_spill] sm:$0xff] }
  0xce   : > { %3173 = vmatprep.subr.mxu0 %v5147_v35  ;;  %3249 = vmatprep.subr.mxu1 %v3792_v11 }
  0xcf   : > { %3056 = vmatmul.mubr.f32.gmra.mxu0 %v4147_v6  ;;  %3250 = vmatpush3.msra.mxu1 %v3792_v11  ;;  %v5152_v11 = vand.u32 4294901760, %v5144_v39  ;;  %v5192_v39 = vld [vmem:[#allocation56_spill] sm:$0xff] }
  0xd0   : > { %3130 = vmatmul.mubr.f32.gmra.mxu1 %v5148_v10  ;;  %3058 = vmatprep.mubr.f32.mxu0 %v4158_v32  ;;  %v5162_v32 = vld [vmem:[#allocation32_spill] sm:$0xff] }
  0xd1   : > { %3132 = vmatprep.mubr.f32.mxu1 %v5149_v12  ;;  %3174 = vmatpush3.msra.mxu0 %v5147_v35 }
  0xd2   : > { %3175 = vmatprep.subr.mxu0 %v5150_v51  ;;  %3251 = vmatprep.subr.mxu1 %v3803_v16 }
  0xd3   : > { %3059 = vmatmul.mubr.f32.gmra.mxu0 %v5151_v49  ;;  %3252 = vmatpush3.msra.mxu1 %v3803_v16  ;;  %v5156_v16 = vand.u32 4294901760, %v4147_v6  ;;  %v5161_v6 = vand.u32 4294901760, %v4184_v57 }
  0xd4   : > { %3133 = vmatmul.mubr.f32.gmra.mxu1 %v5152_v11  ;;  %3061 = vmatprep.mubr.f32.mxu0 %v4184_v57  ;;  %v5165_v57 = vld [vmem:[#allocation33_spill] sm:$0xff] }
  0xd5   : > { %3135 = vmatprep.mubr.f32.mxu1 %v5153_v54  ;;  %3176 = vmatpush3.msra.mxu0 %v5150_v51 }
  0xd6   : > { %3177 = vmatprep.subr.mxu0 %v5154_v23  ;;  %3253 = vmatprep.subr.mxu1 %v3826_v24 }
  0xd7   : > { %3062 = vmatmul.mubr.f32.gmra.mxu0 %v5155_v2  ;;  %3254 = vmatpush3.msra.mxu1 %v3826_v24  ;;  %v5160_v24 = vand.u32 4294901760, %v5151_v49 }
  0xd8   : > { %3136 = vmatmul.mubr.f32.gmra.mxu1 %v5156_v16  ;;  %3064 = vmatprep.mubr.f32.mxu0 %v5157_v55 }
  0xd9   : > { %3138 = vmatprep.mubr.f32.mxu1 %v5158_v61  ;;  %3178 = vmatpush3.msra.mxu0 %v5154_v23 }
  0xda   : > { %3179 = vmatprep.subr.mxu0 %v5159_v36  ;;  %3255 = vmatprep.subr.mxu1 %v3833_v27 }
  0xdb   : > { %3065 = vmatmul.mubr.f32.gmra.mxu0 %v4214_v40  ;;  %3256 = vmatpush3.msra.mxu1 %v3833_v27  ;;  %v5163_v27 = vand.u32 4294901760, %v5155_v2 }
  0xdc   : > { %3139 = vmatmul.mubr.f32.gmra.mxu1 %v5160_v24  ;;  %3067 = vmatprep.mubr.f32.mxu0 %v4230_v7  ;;  %v5171_v7 = vld [vmem:[#allocation44_spill] sm:$0xff] }
  0xdd   : > { %3141 = vmatprep.mubr.f32.mxu1 %v5161_v6  ;;  %3180 = vmatpush3.msra.mxu0 %v5159_v36 }
  0xde   : > { %3181 = vmatprep.subr.mxu0 %v5162_v32  ;;  %3257 = vmatprep.subr.mxu1 %v3852_v34 }
  0xdf   : > { %3068 = vmatmul.mubr.f32.gmra.mxu0 %v4246_v59  ;;  %3258 = vmatpush3.msra.mxu1 %v3852_v34  ;;  %v5166_v34 = vand.u32 4294901760, %v4214_v40  ;;  %v5170_v40 = vand.u32 4294901760, %v4254_v46 }
  0xe0   : > { %3142 = vmatmul.mubr.f32.gmra.mxu1 %v5163_v27  ;;  %3070 = vmatprep.mubr.f32.mxu0 %v4254_v46  ;;  %v5174_v46 = vand.u32 4294901760, %v4278_v31 }
  0xe1   : > { %3144 = vmatprep.mubr.f32.mxu1 %v5164_v3  ;;  %3182 = vmatpush3.msra.mxu0 %v5162_v32 }
  0xe2   : > { %3183 = vmatprep.subr.mxu0 %v5165_v57  ;;  %3259 = vmatprep.subr.mxu1 %v3870_v45 }
  0xe3   : > { %3071 = vmatmul.mubr.f32.gmra.mxu0 %v4267_v29  ;;  %3260 = vmatpush3.msra.mxu1 %v3870_v45  ;;  %v5169_v45 = vand.u32 4294901760, %v4246_v59  ;;  %v5173_v59 = vld [vmem:[#allocation48_spill] sm:$0xff] }
  0xe4   : > { %3145 = vmatmul.mubr.f32.gmra.mxu1 %v5166_v34  ;;  %3073 = vmatprep.mubr.f32.mxu0 %v4278_v31  ;;  %v5180_v31 = vld [vmem:[#allocation34_spill] sm:$0xff] }
  0xe5   : > { %3147 = vmatprep.mubr.f32.mxu1 %v5167_v0  ;;  %3184 = vmatpush3.msra.mxu0 %v5165_v57 }
  0xe6   : > { %3185 = vmatprep.subr.mxu0 %v5168_v53  ;;  %3261 = vmatprep.subr.mxu1 %v5112_v1 }
  0xe7   : > { %3074 = vmatmul.mubr.f32.gmra.mxu0 %v4292_v17  ;;  %3262 = vmatpush3.msra.mxu1 %v5112_v1  ;;  %v5172_v1 = vand.u32 4294901760, %v4267_v29  ;;  %v5178_v29 = vld [vmem:[#allocation31_spill] sm:$0xff] }
  0xe8   : > { %3148 = vmatmul.mubr.f32.gmra.mxu1 %v5169_v45  ;;  %3076 = vmatprep.mubr.f32.mxu0 %v4302_v18  ;;  %v5183_v18 = vld [vmem:[#allocation40_spill] sm:$0xff] }
  0xe9   : > { %3150 = vmatprep.mubr.f32.mxu1 %v5170_v40  ;;  %3186 = vmatpush3.msra.mxu0 %v5168_v53 }
  0xea   : > { %3187 = vmatprep.subr.mxu0 %v5171_v7  ;;  %3263 = vmatprep.subr.mxu1 %v5114_v47 }
  0xeb   : > { %3077 = vmatmul.mubr.f32.gmra.mxu0 %v4314_v25  ;;  %3264 = vmatpush3.msra.mxu1 %v5114_v47  ;;  %v5177_v47 = vand.u32 4294901760, %v4292_v17  ;;  %v5182_v17 = vld [vmem:[#allocation39_spill] sm:$0xff] }
  0xec   : > { %3151 = vmatmul.mubr.f32.gmra.mxu1 %v5172_v1  ;;  %3188 = vmatpush3.msra.mxu0 %v5171_v7  ;;  %v5186_v25 = vld [vmem:[#allocation47_spill] sm:$0xff] }
  0xed   : > { %3189 = vmatprep.subr.mxu0 %v5173_v59  ;;  %3153 = vmatprep.mubr.f32.mxu1 %v5174_v46 }
  0xee   : > { %3190 = vmatpush3.msra.mxu0 %v5173_v59  ;;  %3191 = vmatprep.mubr.f32.mxu0 %v5175_v4 }
  0xef   : > { %3192 = vmatmul.mubr.f32.vlgmr.msra.gmra.mxu0 %v5176_v21  ;;  %3265 = vmatprep.subr.mxu1 %v5117_v19 }
  0xf0   : > { %3154 = vmatmul.mubr.f32.gmra.mxu1 %v5177_v47  ;;  %3194 = vmatprep.mubr.f32.mxu0 %v5178_v29 }
  0xf1   : > { %3156 = vmatprep.mubr.f32.mxu1 %v5179_v22  ;;  %3266 = vmatpush3.msra.mxu1 %v5117_v19  ;;  %v5184_v19 = vld [vmem:[#allocation43_spill] sm:$0xff] }
  0xf2   : > { %3267 = vmatprep.subr.mxu1 %v5119_v37 }
  0xf3   : > { %3195 = vmatmul.mubr.f32.gmra.mxu0 %v5180_v31  ;;  %3268 = vmatpush3.msra.mxu1 %v5119_v37  ;;  %v5185_v37 = vld [vmem:[#allocation45_spill] sm:$0xff] }
  0xf4   : > { %3157 = vmatmul.mubr.f32.gmra.mxu1 %v5181_v20  ;;  %3269 = vmatprep.subr.mxu1 %v5122_v8 }
  0xf5   : > { %3197 = vmatprep.mubr.f32.mxu0 %v5182_v17  ;;  %3270 = vmatpush3.msra.mxu1 %v5122_v8  ;;  %v5188_v8 = vld [vmem:[#allocation50_spill] sm:$0xff] }
  0xf6   : > { %3271 = vmatprep.mubr.f32.mxu1 %v5175_v4 }
  0xf7   : > { %3198 = vmatmul.mubr.f32.gmra.mxu0 %v5183_v18 }
  0xf8   : > { %3272 = vmatmul.mubr.f32.vlgmr.msra.gmra.mxu1 %v5176_v21  ;;  %3200 = vmatprep.mubr.f32.mxu0 %v5184_v19 }
  0xf9   : > { %3274 = vmatprep.mubr.f32.mxu1 %v5178_v29 }
  0xfb   : > { %3201 = vmatmul.mubr.f32.gmra.mxu0 %v5185_v37 }
  0xfc   : > { %3275 = vmatmul.mubr.f32.gmra.mxu1 %v5180_v31  ;;  %3203 = vmatprep.mubr.f32.mxu0 %v5186_v25 }
  0xfd   : > { %3277 = vmatprep.mubr.f32.mxu1 %v5182_v17 }
  0xff   : > { %3204 = vmatmul.mubr.f32.gmra.mxu0 %v5187_v62 }
 0x100   : > { %3278 = vmatmul.mubr.f32.gmra.mxu1 %v5183_v18  ;;  %3206 = vmatprep.mubr.f32.mxu0 %v5188_v8 }
 0x101   : > { %3280 = vmatprep.mubr.f32.mxu1 %v5184_v19 }
 0x103   : > { %3207 = vmatmul.mubr.f32.gmra.mxu0 %v5189_v5 }
 0x104   : > { %3281 = vmatmul.mubr.f32.gmra.mxu1 %v5185_v37  ;;  %3209 = vmatprep.mubr.f32.mxu0 %v5190_v13 }
 0x105   : > { %3283 = vmatprep.mubr.f32.mxu1 %v5186_v25 }
 0x107   : > { %3210 = vmatmul.mubr.f32.gmra.mxu0 %v5191_v50 }
 0x108   : > { %3284 = vmatmul.mubr.f32.gmra.mxu1 %v5187_v62  ;;  %3212 = vmatprep.mubr.f32.mxu0 %v4091_v44 }
 0x109   : > { %3286 = vmatprep.mubr.f32.mxu1 %v5188_v8 }
 0x10b   : > { %3213 = vmatmul.mubr.f32.gmra.mxu0 %v5192_v39 }
 0x10c   : > { %3287 = vmatmul.mubr.f32.gmra.mxu1 %v5189_v5  ;;  %3215 = vmatprep.mubr.f32.mxu0 %v5193_v9 }
 0x10d   : > { %3289 = vmatprep.mubr.f32.mxu1 %v5190_v13 }
 0x10f   : > { %3216 = vmatmul.mubr.f32.gmra.mxu0 %v4128_v15 }
 0x110   : > { %3290 = vmatmul.mubr.f32.gmra.mxu1 %v5191_v50  ;;  %3218 = vmatprep.mubr.f32.mxu0 %v4136_v28 }
 0x111   : > { %3292 = vmatprep.mubr.f32.mxu1 %v4091_v44 }
 0x113   : > { %3219 = vmatmul.mubr.f32.gmra.mxu0 %v4149_v58 }
 0x114   : > { %3293 = vmatmul.mubr.f32.gmra.mxu1 %v5192_v39  ;;  %3221 = vmatprep.mubr.f32.mxu0 %v4160_v14 }
 0x115   : > { %3295 = vmatprep.mubr.f32.mxu1 %v5193_v9 }
 0x117   : > { %3222 = vmatmul.mubr.f32.gmra.mxu0 %v4164_v52 }
 0x118   : > { %3296 = vmatmul.mubr.f32.gmra.mxu1 %v4128_v15  ;;  %3224 = vmatprep.mubr.f32.mxu0 %v4175_v38 }
 0x119   : > { %3298 = vmatprep.mubr.f32.mxu1 %v4136_v28 }
 0x11b   : > { %3225 = vmatmul.mubr.f32.gmra.mxu0 %v4192_v30 }
 0x11c   : > { %3299 = vmatmul.mubr.f32.gmra.mxu1 %v4149_v58  ;;  %3227 = vmatprep.mubr.f32.mxu0 %v4208_v41 }
 0x11d   : > { %3301 = vmatprep.mubr.f32.mxu1 %v4160_v14 }
 0x11f   : > { %3228 = vmatmul.mubr.f32.gmra.mxu0 %v4222_v48 }
 0x120   : > { %3302 = vmatmul.mubr.f32.gmra.mxu1 %v4164_v52  ;;  %3230 = vmatprep.mubr.f32.mxu0 %v4232_v60 }
 0x121   : > { %3304 = vmatprep.mubr.f32.mxu1 %v4175_v38 }
 0x123   : > { %3231 = vmatmul.mubr.f32.gmra.mxu0 %v4249_v33 }
 0x124   : > { %3305 = vmatmul.mubr.f32.gmra.mxu1 %v4192_v30  ;;  %3233 = vmatprep.mubr.f32.mxu0 %v4256_v42 }
 0x125   : > { %3307 = vmatprep.mubr.f32.mxu1 %v4208_v41 }
 0x127   : > { %3234 = vmatmul.mubr.f32.gmra.mxu0 %v4270_v43 }
 0x128   : > { %3308 = vmatmul.mubr.f32.gmra.mxu1 %v4222_v48  ;;  %3236 = vmatprep.mubr.f32.mxu0 %v4280_v63 }
 0x129   : > { %3310 = vmatprep.mubr.f32.mxu1 %v4232_v60 }
 0x12b   : > { %3237 = vmatmul.mubr.f32.gmra.mxu0 %v4294_v26 }
 0x12c   : > { %3311 = vmatmul.mubr.f32.gmra.mxu1 %v4249_v33 }
 0x12d   : > { %3313 = vmatprep.mubr.f32.mxu1 %v4256_v42 }
 0x12f   : > { %v2873_v38 = vpop.f32.mrf.mxu0 }
 0x130   : > { %3314 = vmatmul.mubr.f32.gmra.mxu1 %v4270_v43 }
 0x131   : > { %v371_v44 = vpop.f32.mrf.mxu0  ;;  %3316 = vmatprep.mubr.f32.mxu1 %v4280_v63 }
 0x133   : > { %v2876_v41 = vpop.f32.mrf.mxu0 }
 0x134   : > { %3317 = vmatmul.mubr.f32.gmra.mxu1 %v4294_v26 }
 0x135   : > { %v391_v48 = vpop.f32.mrf.mxu0 }
 0x137   : > { %v2879_v52 = vpop.f32.mrf.mxu0 }
 0x138   : > { %v2953_v58 = vpop.f32.mrf.mxu1 }
 0x139   : > { %v4592_v15 = vadd.f32 %v2953_v58, %v2873_v38  ;;  %v411_v28 = vpop.f32.mrf.mxu0 }
 0x13a   : > { %v832_v14 = vpop.f32.mrf.mxu1 }
 0x13b   : > { %v4594_v30 = vadd.f32 %v832_v14, %v371_v44  ;;  %v2882_v60 = vpop.f32.mrf.mxu0 }
 0x13c   : > { %v2956_v33 = vpop.f32.mrf.mxu1 }
 0x13d   : > { %v4596_v42 = vadd.f32 %v2956_v33, %v2876_v41  ;;  %v431_v43 = vpop.f32.mrf.mxu0 }
 0x13e   : > { %v844_v56 = vpop.f32.mrf.mxu1 }
 0x13f   : > { %v4598_v35 = vadd.f32 %v844_v56, %v391_v48  ;;  %v2885_v63 = vpop.f32.mrf.mxu0 }
 0x140   : > { %v2959_v10 = vpop.f32.mrf.mxu1 }
 0x141   : > { %v4600_v26 = vadd.f32 %v2959_v10, %v2879_v52  ;;  %v451_v12 = vpop.f32.mrf.mxu0 }
 0x142   : > { %v856_v51 = vpop.f32.mrf.mxu1 }
 0x143   : > { %v4602_v49 = vadd.f32 %v856_v51, %v411_v28  ;;  %v2888_v11 = vpop.f32.mrf.mxu0 }
 0x144   : > { %v2962_v54 = vpop.f32.mrf.mxu1 }
 0x145   : > { %v4604_v23 = vadd.f32 %v2962_v54, %v2882_v60  ;;  %v471_v2 = vpop.f32.mrf.mxu0 }
 0x146   : > { %v868_v16 = vpop.f32.mrf.mxu1 }
 0x147   : > { %v4606_v55 = vadd.f32 %v868_v16, %v431_v43  ;;  %v2891_v61 = vpop.f32.mrf.mxu0 }
 0x148   : > { %v2965_v36 = vpop.f32.mrf.mxu1 }
 0x149   : > { %v4608_v24 = vadd.f32 %v2965_v36, %v2885_v63  ;;  %v491_v6 = vpop.f32.mrf.mxu0 }
 0x14a   : > { %v880_v32 = vpop.f32.mrf.mxu1 }
 0x14b   : > { %v4610_v27 = vadd.f32 %v880_v32, %v451_v12  ;;  %v2894_v3 = vpop.f32.mrf.mxu0 }
 0x14c   : > { %v2968_v57 = vpop.f32.mrf.mxu1 }
 0x14d   : > { %v4612_v34 = vadd.f32 %v2968_v57, %v2888_v11  ;;  %v511_v0 = vpop.f32.mrf.mxu0 }
 0x14e   : > { %v892_v53 = vpop.f32.mrf.mxu1 }
 0x14f   : > { %v4614_v45 = vadd.f32 %v892_v53, %v471_v2  ;;  %v2897_v40 = vpop.f32.mrf.mxu0 }
 0x150   : > { %v2971_v7 = vpop.f32.mrf.mxu1 }
 0x151   : > { %v4616_v1 = vadd.f32 %v2971_v7, %v2891_v61  ;;  %v531_v59 = vpop.f32.mrf.mxu0 }
 0x152   : > { %v904_v46 = vpop.f32.mrf.mxu1 }
 0x153   : > { %v4618_v4 = vadd.f32 %v904_v46, %v491_v6  ;;  %v2900_v21 = vpop.f32.mrf.mxu0 }
 0x154   : > { %v2974_v47 = vpop.f32.mrf.mxu1 }
 0x155   : > { %v4620_v29 = vadd.f32 %v2974_v47, %v2894_v3  ;;  %v551_v22 = vpop.f32.mrf.mxu0 }
 0x156   : > { %v916_v31 = vpop.f32.mrf.mxu1 }
 0x157   : > { %v4622_v20 = vadd.f32 %v916_v31, %v511_v0  ;;  %v2903_v17 = vpop.f32.mrf.mxu0 }
 0x158   : > { %v2977_v18 = vpop.f32.mrf.mxu1 }
 0x159   : > { %v4624_v19 = vadd.f32 %v2977_v18, %v2897_v40  ;;  %v571_v37 = vpop.f32.mrf.mxu0 }
 0x15a   : > { %v928_v25 = vpop.f32.mrf.mxu1 }
 0x15b   : > { %v4626_v62 = vadd.f32 %v928_v25, %v531_v59  ;;  %v2906_v8 = vpop.f32.mrf.mxu0 }
 0x15c   : > { %v2980_v5 = vpop.f32.mrf.mxu1 }
 0x15d   : > { %v4628_v13 = vadd.f32 %v2980_v5, %v2900_v21  ;;  %v591_v50 = vpop.f32.mrf.mxu0 }
 0x15e   : > { %v940_v39 = vpop.f32.mrf.mxu1 }
 0x15f   : > { %v4630_v9 = vadd.f32 %v940_v39, %v551_v22  ;;  %v2909_v38 = vpop.f32.mrf.mxu0 }
 0x160   : > { %v2983_v44 = vpop.f32.mrf.mxu1 }
 0x161   : > { %v4632_v41 = vadd.f32 %v2983_v44, %v2903_v17  ;;  %v611_v48 = vpop.f32.mrf.mxu0 }
 0x162   : > { %v952_v52 = vpop.f32.mrf.mxu1 }
 0x163   : > { %v4634_v58 = vadd.f32 %v952_v52, %v571_v37  ;;  %v2912_v28 = vpop.f32.mrf.mxu0 }
 0x164   : > { %v2986_v14 = vpop.f32.mrf.mxu1 }
 0x165   : > { %v4636_v60 = vadd.f32 %v2986_v14, %v2906_v8  ;;  %v631_v33 = vpop.f32.mrf.mxu0 }
 0x166   : > { %v964_v43 = vpop.f32.mrf.mxu1 }
 0x167   : > { %v4638_v56 = vadd.f32 %v964_v43, %v591_v50  ;;  %v2915_v63 = vpop.f32.mrf.mxu0 }
 0x168   : > { %v2989_v10 = vpop.f32.mrf.mxu1 }
 0x169   : > { %v4640_v12 = vadd.f32 %v2989_v10, %v2909_v38  ;;  %v651_v51 = vpop.f32.mrf.mxu0 }
 0x16a   : > { %v976_v11 = vpop.f32.mrf.mxu1 }
 0x16b   : > { %v4642_v54 = vadd.f32 %v976_v11, %v611_v48  ;;  %v2918_v2 = vpop.f32.mrf.mxu0 }
 0x16c   : > { %v2992_v16 = vpop.f32.mrf.mxu1 }
 0x16d   : > { %v4644_v61 = vadd.f32 %v2992_v16, %v2912_v28  ;;  %v671_v36 = vpop.f32.mrf.mxu0 }
 0x16e   : > { %v988_v6 = vpop.f32.mrf.mxu1 }
 0x16f   : > { %v4646_v32 = vadd.f32 %v988_v6, %v631_v33  ;;  %v3033_v3 = vpop.f32.mrf.mxu0 }
 0x170   : > { %v2995_v57 = vpop.f32.mrf.mxu1  ;;  %v1130_v0 = vadd.f32 %v3033_v3, %v4592_v15 }
 0x171   : > { %v4649_v53 = vadd.f32 %v2995_v57, %v2915_v63  ;;  %v1122_v40 = vpop.f32.mrf.mxu0 }
 0x172   : > { %v1000_v7 = vpop.f32.mrf.mxu1  ;;  %v1123_v59 = vadd.f32 %v1122_v40, %v4594_v30 }
 0x173   : > { %v4652_v46 = vadd.f32 %v1000_v7, %v651_v51  ;;  %v3036_v21 = vpop.f32.mrf.mxu0 }
 0x174   : > { %v2998_v47 = vpop.f32.mrf.mxu1  ;;  %v1144_v22 = vadd.f32 %v3036_v21, %v4596_v42 }
 0x175   : > { %v4655_v31 = vadd.f32 %v2998_v47, %v2918_v2  ;;  %v1136_v17 = vpop.f32.mrf.mxu0 }
 0x176   : > { %v1012_v18 = vpop.f32.mrf.mxu1  ;;  %v1137_v37 = vadd.f32 %v1136_v17, %v4598_v35 }
 0x177   : > { %v4658_v25 = vadd.f32 %v1012_v18, %v671_v36  ;;  %v3039_v15 = vpop.f32.mrf.mxu0 }
 0x178   : > { %v1158_v8 = vadd.f32 %v3039_v15, %v4600_v26  ;;  %v3113_v5 = vpop.f32.mrf.mxu1 }
 0x179   : > { %v4661_v50 = vadd.f32 %v3113_v5, %v1130_v0  ;;  %v1150_v30 = vpop.f32.mrf.mxu0 }
 0x17a   : > { %v1151_v39 = vadd.f32 %v1150_v30, %v4602_v49  ;;  %v1428_v38 = vpop.f32.mrf.mxu1 }
 0x17b   : > { %v4664_v44 = vadd.f32 %v1428_v38, %v1123_v59  ;;  %v3042_v42 = vpop.f32.mrf.mxu0 }
 0x17c   : > { %v1172_v48 = vadd.f32 %v3042_v42, %v4604_v23  ;;  %v3116_v52 = vpop.f32.mrf.mxu1 }
 0x17d   : > { %v4667_v28 = vadd.f32 %v3116_v52, %v1144_v22  ;;  %v1164_v35 = vpop.f32.mrf.mxu0 }
 0x17e   : > { %v1165_v14 = vadd.f32 %v1164_v35, %v4606_v55  ;;  %v1444_v33 = vpop.f32.mrf.mxu1 }
 0x17f   : > { %v4670_v26 = vadd.f32 %v1444_v33, %v1137_v37  ;;  %v3045_v43 = vpop.f32.mrf.mxu0 }
 0x180   : > { %v1186_v63 = vadd.f32 %v3045_v43, %v4608_v24  ;;  %v3119_v10 = vpop.f32.mrf.mxu1 }
 0x181   : > { %v4673_v49 = vadd.f32 %v3119_v10, %v1158_v8  ;;  %v1178_v51 = vpop.f32.mrf.mxu0 }
 0x182   : > { %v1179_v11 = vadd.f32 %v1178_v51, %v4610_v27  ;;  %v1460_v2 = vpop.f32.mrf.mxu1 }
 0x183   : > { %v4676_v23 = vadd.f32 %v1460_v2, %v1151_v39  ;;  %v3048_v16 = vpop.f32.mrf.mxu0 }
 0x184   : > { %v1200_v36 = vadd.f32 %v3048_v16, %v4612_v34  ;;  %v3122_v6 = vpop.f32.mrf.mxu1 }
 0x185   : > { %v4679_v55 = vadd.f32 %v3122_v6, %v1172_v48  ;;  %v1192_v3 = vpop.f32.mrf.mxu0 }
 0x186   : > { %v1193_v57 = vadd.f32 %v1192_v3, %v4614_v45  ;;  %v1476_v0 = vpop.f32.mrf.mxu1 }
 0x187   : > { %v4682_v24 = vadd.f32 %v1476_v0, %v1165_v14  ;;  %v3051_v40 = vpop.f32.mrf.mxu0 }
 0x188   : > { %v1214_v7 = vadd.f32 %v3051_v40, %v4616_v1  ;;  %v3125_v59 = vpop.f32.mrf.mxu1 }
 0x189   : > { %v4685_v27 = vadd.f32 %v3125_v59, %v1186_v63  ;;  %v1206_v21 = vpop.f32.mrf.mxu0 }
 0x18a   : > { %v1207_v47 = vadd.f32 %v1206_v21, %v4618_v4  ;;  %v1492_v22 = vpop.f32.mrf.mxu1 }
 0x18b   : > { %v4688_v34 = vadd.f32 %v1492_v22, %v1179_v11  ;;  %v3054_v17 = vpop.f32.mrf.mxu0 }
 0x18c   : > { %v1228_v18 = vadd.f32 %v3054_v17, %v4620_v29  ;;  %v3128_v37 = vpop.f32.mrf.mxu1 }
 0x18d   : > { %v4691_v45 = vadd.f32 %v3128_v37, %v1200_v36  ;;  %v1220_v15 = vpop.f32.mrf.mxu0 }
 0x18e   : > { %v1221_v8 = vadd.f32 %v1220_v15, %v4622_v20  ;;  %v1508_v5 = vpop.f32.mrf.mxu1 }
 0x18f   : > { %v4694_v1 = vadd.f32 %v1508_v5, %v1193_v57  ;;  %v3057_v30 = vpop.f32.mrf.mxu0 }
 0x190   : > { %v1242_v39 = vadd.f32 %v3057_v30, %v4624_v19  ;;  %v3131_v38 = vpop.f32.mrf.mxu1 }
 0x191   : > { %v4697_v4 = vadd.f32 %v3131_v38, %v1214_v7  ;;  %v1234_v42 = vpop.f32.mrf.mxu0 }
 0x192   : > { %v1235_v48 = vadd.f32 %v1234_v42, %v4626_v62  ;;  %v1524_v52 = vpop.f32.mrf.mxu1 }
 0x193   : > { %v4700_v29 = vadd.f32 %v1524_v52, %v1207_v47  ;;  %v3060_v35 = vpop.f32.mrf.mxu0 }
 0x194   : > { %v1256_v14 = vadd.f32 %v3060_v35, %v4628_v13  ;;  %v3134_v33 = vpop.f32.mrf.mxu1 }
 0x195   : > { %5194 = vst [vmem:[#allocation19_spill] sm:$0xff] %v4700_v29  ;;  %v4703_v20 = vadd.f32 %v3134_v33, %v1228_v18  ;;  %v1248_v43 = vpop.f32.mrf.mxu0 }
 0x196   : > { %v1249_v63 = vadd.f32 %v1248_v43, %v4630_v9  ;;  %v1540_v10 = vpop.f32.mrf.mxu1  ;;  %v3428_v9 = vld [vmem:[#allocation7] sm:$0xff]  }
 0x197   : > { %5195 = vst [vmem:[#allocation38_spill] sm:$0xff] %v4703_v20  ;;  %v4706_v19 = vadd.f32 %v1540_v10, %v1221_v8  ;;  %v3063_v51 = vpop.f32.mrf.mxu0  ;;  %3335 = vmatprep.mubr.bf16.mxu0 %v3428_v9 }
 0x198   : > { %v1270_v11 = vadd.f32 %v3063_v51, %v4632_v41  ;;  %v3137_v2 = vpop.f32.mrf.mxu1 }
 0x199   : > { %5196 = vst [vmem:[#allocation20_spill] sm:$0xff] %v4706_v19  ;;  %v4709_v62 = vadd.f32 %v3137_v2, %v1242_v39  ;;  %v1262_v16 = vpop.f32.mrf.mxu0 }
 0x19a   : > { %v1263_v36 = vadd.f32 %v1262_v16, %v4634_v58  ;;  %v1556_v6 = vpop.f32.mrf.mxu1 }
 0x19b   : > { %v4712_v13 = vadd.f32 %v1556_v6, %v1235_v48  ;;  %v3066_v3 = vpop.f32.mrf.mxu0 }
 0x19c   : > { %v1284_v57 = vadd.f32 %v3066_v3, %v4636_v60  ;;  %v3140_v0 = vpop.f32.mrf.mxu1 }
 0x19d   : > { %v4715_v40 = vadd.f32 %v3140_v0, %v1256_v14  ;;  %v1276_v7 = vpop.f32.mrf.mxu0 }
 0x19e   : > { %v1277_v59 = vadd.f32 %v1276_v7, %v4638_v56  ;;  %v1572_v41 = vpop.f32.mrf.mxu1 }
 0x19f   : > { %v4718_v21 = vadd.f32 %v1572_v41, %v1249_v63  ;;  %v3069_v47 = vpop.f32.mrf.mxu0 }
 0x1a0   : > { %v1298_v58 = vadd.f32 %v3069_v47, %v4640_v12  ;;  %v3143_v22 = vpop.f32.mrf.mxu1 }
 0x1a1   : > { %v4721_v17 = vadd.f32 %v3143_v22, %v1270_v11  ;;  %v1290_v18 = vpop.f32.mrf.mxu0 }
 0x1a2   : > { %v1291_v60 = vadd.f32 %v1290_v18, %v4642_v54  ;;  %v1588_v37 = vpop.f32.mrf.mxu1 }
 0x1a3   : > { %v4724_v15 = vadd.f32 %v1588_v37, %v1263_v36  ;;  %v3072_v8 = vpop.f32.mrf.mxu0 }
 0x1a4   : > { %v1312_v5 = vadd.f32 %v3072_v8, %v4644_v61  ;;  %v3146_v56 = vpop.f32.mrf.mxu1 }
 0x1a5   : > { %v4727_v30 = vadd.f32 %v3146_v56, %v1284_v57  ;;  %v1304_v39 = vpop.f32.mrf.mxu0 }
 0x1a6   : > { %v1305_v38 = vadd.f32 %v1304_v39, %v4646_v32  ;;  %v1604_v42 = vpop.f32.mrf.mxu1 }
 0x1a7   : > { %v4730_v12 = vadd.f32 %v1604_v42, %v1277_v59  ;;  %v3075_v48 = vpop.f32.mrf.mxu0 }
 0x1a8   : > { %v1326_v52 = vadd.f32 %v3075_v48, %v4649_v53  ;;  %v3149_v35 = vpop.f32.mrf.mxu1 }
 0x1a9   : > { %v4733_v54 = vadd.f32 %v3149_v35, %v1298_v58  ;;  %v1318_v14 = vpop.f32.mrf.mxu0 }
 0x1aa   : > { %v1319_v33 = vadd.f32 %v1318_v14, %v4652_v46  ;;  %v1620_v43 = vpop.f32.mrf.mxu1 }
 0x1ab   : > { %v4736_v61 = vadd.f32 %v1620_v43, %v1291_v60  ;;  %v4738_v63 = vpop.f32.mrf.mxu0 }
 0x1ac   : > { %v3152_v10 = vpop.f32.mrf.mxu1 }
 0x1ad   : > { %v4740_v51 = vadd.f32 %v3152_v10, %v1312_v5  ;;  %v4742_v32 = vpop.f32.mrf.mxu0 }
 0x1ae   : > { %v1636_v11 = vpop.f32.mrf.mxu1 }
 0x1af   : > { %v4744_v2 = vadd.f32 %v1636_v11, %v1305_v38  ;;  %v3193_v53 = vpop.f32.mrf.mxu0 }
 0x1b0   : > { %v3155_v16 = vpop.f32.mrf.mxu1  ;;  %v1802_v36 = vadd.f32 %v3193_v53, %v4661_v50 }
 0x1b1   : > { %v4747_v6 = vadd.f32 %v3155_v16, %v1326_v52  ;;  %v1795_v46 = vpop.f32.mrf.mxu0 }
 0x1b2   : > { %v1652_v3 = vpop.f32.mrf.mxu1  ;;  %v1796_v57 = vadd.f32 %v1795_v46, %v4664_v44 }
 0x1b3   : > { %5197 = vst [vmem:[#allocation27_spill] sm:$0xff] %v4747_v6  ;;  %v4750_v0 = vadd.f32 %v1652_v3, %v1319_v33  ;;  %v3196_v9 = vpop.f32.mrf.mxu0 }
 0x1b4   : > { %v4752_v7 = vpop.f32.mrf.mxu1  ;;  %v1814_v59 = vadd.f32 %v3196_v9, %v4667_v28 }
 0x1b5   : > { %5198 = vst [vmem:[#allocation29_spill] sm:$0xff] %v4750_v0  ;;  %v1807_v41 = vpop.f32.mrf.mxu0 }
 0x1b6   : > { %v4755_v47 = vpop.f32.mrf.mxu1  ;;  %v1808_v58 = vadd.f32 %v1807_v41, %v4670_v26 }
 0x1b7   : > { %5199 = vst [vmem:[#allocation26_spill] sm:$0xff] %v4755_v47  ;;  %v3199_v22 = vpop.f32.mrf.mxu0 }
 0x1b8   : > { %v1826_v50 = vadd.f32 %v3199_v22, %v4673_v49  ;;  %v3273_v18 = vpop.f32.mrf.mxu1 }
 0x1b9   : > { %v2075_v60 = vadd.f32 %v3273_v18, %v1802_v36  ;;  %v1819_v37 = vpop.f32.mrf.mxu0 }
 0x1ba   : > { %v1820_v44 = vadd.f32 %v1819_v37, %v4676_v23  ;;  %v2068_v8 = vpop.f32.mrf.mxu1 }
 0x1bb   : > { %v2069_v5 = vadd.f32 %v2068_v8, %v1796_v57  ;;  %v3202_v56 = vpop.f32.mrf.mxu0  ;;  %v2259_v19 = vmul.f32 %v2075_v60, %v2075_v60 }
 0x1bc   : > { %v1838_v39 = vadd.f32 %v3202_v56, %v4679_v55  ;;  %v3276_v38 = vpop.f32.mrf.mxu1 }
 0x1bd   : > { %v2087_v28 = vadd.f32 %v3276_v38, %v1814_v59  ;;  %v4761_v42 = vpop.f32.mrf.mxu0  ;;  %v2258_v20 = vmul.f32 %v2069_v5, %v2069_v5 }
 0x1be   : > { %v2080_v48 = vpop.f32.mrf.mxu1 }
 0x1bf   : > { %v2081_v52 = vadd.f32 %v2080_v48, %v1808_v58  ;;  %v4763_v26 = vpop.f32.mrf.mxu0 }
 0x1c0   : > { %v3279_v35 = vpop.f32.mrf.mxu1 }
 0x1c1   : > { %v2099_v49 = vadd.f32 %v3279_v35, %v1826_v50  ;;  %v4765_v14 = vpop.f32.mrf.mxu0 }
 0x1c2   : > { %v2092_v33 = vpop.f32.mrf.mxu1 }
 0x1c3   : > { %v4767_v43 = vadd.f32 %v2092_v33, %v1820_v44  ;;  %v4769_v23 = vpop.f32.mrf.mxu0 }
 0x1c4   : > { %v3282_v10 = vpop.f32.mrf.mxu1 }
 0x1c5   : > { %v4771_v11 = vadd.f32 %v3282_v10, %v1838_v39  ;;  %v4773_v55 = vpop.f32.mrf.mxu0 }
 0x1c6   : > { %v2104_v53 = vpop.f32.mrf.mxu1 }
 0x1c7   : > { %v4775_v16 = vpop.f32.mrf.mxu0 }
 0x1c8   : > { %v4777_v36 = vpop.f32.mrf.mxu1 }
 0x1c9   : > { %v4779_v46 = vpop.f32.mrf.mxu0 }
 0x1ca   : > { %5200 = vst [vmem:[#allocation35_spill] sm:$0xff] %v4779_v46  ;;  %v4781_v3 = vpop.f32.mrf.mxu1  ;;  %v2261_v46 = vmul.f32 %v2087_v28, %v2087_v28 }
 0x1cb   : > { %v4783_v57 = vpop.f32.mrf.mxu0 }
 0x1cc   : > { %5201 = vst [vmem:[#allocation28_spill] sm:$0xff] %v4783_v57  ;;  %v4785_v9 = vpop.f32.mrf.mxu1 }
 0x1cd   : > { %v4787_v59 = vpop.f32.mrf.mxu0 }
 0x1ce   : > { %5202 = vst [vmem:[#allocation12_spill] sm:$0xff] %v4787_v59  ;;  %v4789_v41 = vpop.f32.mrf.mxu1 }
 0x1cf   : > { %v3217_v58 = vpop.f32.mrf.mxu0 }
 0x1d0   : > { %v4791_v22 = vpop.f32.mrf.mxu1  ;;  %v1898_v39 = vadd.f32 %v3217_v58, %v4709_v62 }
 0x1d1   : > { %5203 = vst [vmem:[#allocation37_spill] sm:$0xff] %v4791_v22  ;;  %v1891_v50 = vpop.f32.mrf.mxu0 }
 0x1d2   : > { %v4793_v18 = vpop.f32.mrf.mxu1  ;;  %v1892_v35 = vadd.f32 %v1891_v50, %v4712_v13 }
 0x1d3   : > { %5204 = vst [vmem:[#allocation36_spill] sm:$0xff] %v4793_v18  ;;  %v3220_v37 = vpop.f32.mrf.mxu0 }
 0x1d4   : > { %v4795_v44 = vpop.f32.mrf.mxu1  ;;  %v1910_v47 = vadd.f32 %v3220_v37, %v4715_v40  ;;  %v2260_v40 = vmul.f32 %v2081_v52, %v2081_v52 }
 0x1d5   : > { %5205 = vst [vmem:[#allocation42_spill] sm:$0xff] %v4795_v44  ;;  %v1903_v8 = vpop.f32.mrf.mxu0 }
 0x1d6   : > { %v4797_v56 = vpop.f32.mrf.mxu1  ;;  %v1904_v6 = vadd.f32 %v1903_v8, %v4718_v21 }
 0x1d7   : > { %5206 = vst [vmem:[#allocation13_spill] sm:$0xff] %v4797_v56  ;;  %v3223_v38 = vpop.f32.mrf.mxu0 }
 0x1d8   : > { %v3297_v48 = vpop.f32.mrf.mxu1  ;;  %v1922_v13 = vadd.f32 %v3223_v38, %v4721_v17 }
 0x1d9   : > { %v2171_v33 = vadd.f32 %v3297_v48, %v1898_v39  ;;  %v1915_v10 = vpop.f32.mrf.mxu0 }
 0x1da   : > { %v2164_v59 = vpop.f32.mrf.mxu1 }
 0x1db   : > { %v2275_v0 = vmul.f32 %v2171_v33, %v2171_v33  ;;  %v2165_v18 = vadd.f32 %v2164_v59, %v1892_v35  ;;  %v3226_v57 = vpop.f32.mrf.mxu0  ;;  %v1916_v59 = vadd.f32 %v1915_v10, %v4724_v15  ;;  %v1850_v15 = vadd.f32 %v4763_v26, %v4685_v27 }
 0x1dc   : > { %v3300_v44 = vpop.f32.mrf.mxu1  ;;  %v2265_v27 = vmul.f32 %v4771_v11, %v4771_v11 }
 0x1dd   : > { %v2291_v56 = vadd.f32 %v2275_v0, %v2259_v19  ;;  %v2274_v22 = vmul.f32 %v2165_v18, %v2165_v18  ;;  %v2183_v62 = vadd.f32 %v3300_v44, %v1910_v47  ;;  %v1927_v58 = vpop.f32.mrf.mxu0  ;;  %v1832_v0 = vadd.f32 %v4761_v42, %v4682_v24 }
 0x1de   : > { %v2176_v29 = vpop.f32.mrf.mxu1  ;;  %v2263_v47 = vmul.f32 %v2099_v49, %v2099_v49  ;;  %v1928_v18 = vadd.f32 %v1927_v58, %v4730_v12  ;;  %v2123_v26 = vadd.f32 %v4777_v36, %v1850_v15  ;;  %v1862_v58 = vadd.f32 %v4769_v23, %v4691_v45  ;;  %v5211_v15 = vld [vmem:[#allocation38_spill] sm:$0xff] }
 0x1df   : > { %v2290_v50 = vadd.f32 %v2274_v22, %v2258_v20  ;;  %v2277_v39 = vmul.f32 %v2183_v62, %v2183_v62  ;;  %v2177_v60 = vadd.f32 %v2176_v29, %v1904_v6  ;;  %v3229_v48 = vpop.f32.mrf.mxu0  ;;  %v1934_v20 = vadd.f32 %v3226_v57, %v4727_v30 }
 0x1e0   : > { %v3303_v37 = vpop.f32.mrf.mxu1  ;;  %v2105_v22 = vadd.f32 %v2104_v53, %v1832_v0  ;;  %v1340_v30 = vadd.f32 %v4738_v63, %v4655_v31  ;;  %v1844_v57 = vadd.f32 %v4765_v14, %v4688_v34  ;;  %v1946_v12 = vadd.f32 %v3229_v48, %v4733_v54 }
 0x1e1   : > { %v2293_v5 = vadd.f32 %v2277_v39, %v2261_v46  ;;  %v2276_v35 = vmul.f32 %v2177_v60, %v2177_v60  ;;  %v2195_v33 = vadd.f32 %v3303_v37, %v1922_v13  ;;  %v1939_v21 = vpop.f32.mrf.mxu0  ;;  %v4805_v19 = vpack.c.bf16 %v2291_v56, %v2290_v50 }
 0x1e2   : > { %v2188_v28 = vpop.f32.mrf.mxu1  ;;  %v2262_v46 = vmul.f32 %v4767_v43, %v4767_v43  ;;  %v2264_v13 = vmul.f32 %v2105_v22, %v2105_v22  ;;  %v2117_v31 = vadd.f32 %v4781_v3, %v1844_v57  ;;  %v1940_v34 = vadd.f32 %v1939_v21, %v4736_v61 }
 0x1e3   : > { %v2292_v17 = vadd.f32 %v2276_v35, %v2260_v40  ;;  %v2279_v29 = vmul.f32 %v2195_v33, %v2195_v33  ;;  %v2189_v6 = vadd.f32 %v2188_v28, %v1916_v59  ;;  %v3232_v52 = vpop.f32.mrf.mxu0  ;;  %v1333_v54 = vadd.f32 %v4742_v32, %v4658_v25 }
 0x1e4   : > { %v3306_v44 = vpop.f32.mrf.mxu1  ;;  %v1856_v60 = vadd.f32 %v4773_v55, %v4694_v1  ;;  %v2267_v48 = vmul.f32 %v2123_v26, %v2123_v26  ;;  %v2135_v45 = vadd.f32 %v4785_v9, %v1862_v58  ;;  %v1958_v3 = vadd.f32 %v3232_v52, %v4740_v51  ;;  %v5207_v51 = vld [vmem:[#allocation19_spill] sm:$0xff]  ;;  %v5218_v58 = vld [vmem:[#allocation42_spill] sm:$0xff] }
 0x1e5   : > { %v2295_v8 = vadd.f32 %v2279_v29, %v2263_v47  ;;  %v2278_v24 = vmul.f32 %v2189_v6, %v2189_v6  ;;  %v2207_v42 = vadd.f32 %v3306_v44, %v1934_v20  ;;  %v1951_v49 = vpop.f32.mrf.mxu0  ;;  %v4815_v56 = vpack.c.bf16 %v2293_v5, %v2292_v17  ;;  %v5208_v47 = vld [vmem:[#allocation35_spill] sm:$0xff]  ;;  %v5209_v17 = vld [vmem:[#allocation37_spill] sm:$0xff]  ;;  %v5213_v44 = vld [vmem:[#allocation36_spill] sm:$0xff] }
 0x1e6   : > { %v2200_v43 = vpop.f32.mrf.mxu1  ;;  %v1874_v37 = vadd.f32 %v4775_v16, %v4697_v4  ;;  %v2266_v5 = vmul.f32 %v2117_v31, %v2117_v31  ;;  %v2129_v35 = vadd.f32 %v4789_v41, %v1856_v60  ;;  %v1952_v25 = vadd.f32 %v1951_v49, %v4744_v2  ;;  %v5210_v16 = vld [vmem:[#allocation27_spill] sm:$0xff] }
 0x1e7   : > { %v2294_v53 = vadd.f32 %v2278_v24, %v2262_v46  ;;  %v2281_v38 = vmul.f32 %v2207_v42, %v2207_v42  ;;  %v2201_v10 = vadd.f32 %v2200_v43, %v1928_v18  ;;  %v3235_v62 = vpop.f32.mrf.mxu0  ;;  %v1677_v0 = vadd.f32 %v4752_v7, %v1340_v30  ;;  %v5212_v46 = vld [vmem:[#allocation28_spill] sm:$0xff]  ;;  %v5214_v24 = vld [vmem:[#allocation29_spill] sm:$0xff]  ;;  %v5215_v43 = vld [vmem:[#allocation26_spill] sm:$0xff] }
 0x1e8   : > { %v3309_v63 = vpop.f32.mrf.mxu1  ;;  %v1868_v28 = vadd.f32 %v5208_v47, %v5207_v51  ;;  %v2269_v20 = vmul.f32 %v2135_v45, %v2135_v45  ;;  %v2147_v29 = vadd.f32 %v5209_v17, %v1874_v37  ;;  %v1970_v6 = vadd.f32 %v3235_v62, %v5210_v16 }
 0x1e9   : > { %v2297_v14 = vadd.f32 %v2281_v38, %v2265_v27  ;;  %v2280_v11 = vmul.f32 %v2201_v10, %v2201_v10  ;;  %v2219_v50 = vadd.f32 %v3309_v63, %v1946_v12  ;;  %v1963_v36 = vpop.f32.mrf.mxu0  ;;  %v4829_v39 = vpack.c.bf16 %v2295_v8, %v2294_v53  ;;  %v5216_v53 = vld [vmem:[#allocation20_spill] sm:$0xff] }
 0x1ea   : > { %v2212_v23 = vpop.f32.mrf.mxu1  ;;  %v1886_v22 = vadd.f32 %v5212_v46, %v5211_v15  ;;  %v2268_v18 = vmul.f32 %v2129_v35, %v2129_v35  ;;  %v2141_v8 = vadd.f32 %v5213_v44, %v1868_v28  ;;  %v1964_v7 = vadd.f32 %v1963_v36, %v5214_v24  ;;  %v5217_v38 = vld [vmem:[#allocation12_spill] sm:$0xff]  ;;  %v5219_v36 = vld [vmem:[#allocation13_spill] sm:$0xff] }
 0x1eb   : > { %v2296_v61 = vadd.f32 %v2280_v11, %v2264_v13  ;;  %v2283_v40 = vmul.f32 %v2219_v50, %v2219_v50  ;;  %v2213_v59 = vadd.f32 %v2212_v23, %v1940_v34  ;;  %v3238_v55 = vpop.f32.mrf.mxu0  ;;  %v1669_v12 = vadd.f32 %v5215_v43, %v1333_v54 }
 0x1ec   : > { %v3312_v32 = vpop.f32.mrf.mxu1  ;;  %v1880_v10 = vadd.f32 %v5217_v38, %v5216_v53  ;;  %v2271_v62 = vmul.f32 %v2147_v29, %v2147_v29  ;;  %v2159_v13 = vadd.f32 %v5218_v58, %v1886_v22  ;;  %v1982_v34 = vadd.f32 %v3238_v55, %v1677_v0  ;;  %v3429_v0 = vld [vmem:[#allocation7 + $0x8] sm:$0xff]  }
 0x1ed   : > { %v2299_v33 = vadd.f32 %v2283_v40, %v2267_v48  ;;  %v2282_v1 = vmul.f32 %v2213_v59, %v2213_v59  ;;  %v2231_v21 = vadd.f32 %v3312_v32, %v1958_v3  ;;  %v2313_v9 = vpack.c.bf16 %v2297_v14, %v2296_v61  ;;  %v1975_v30 = vpop.f32.mrf.mxu0 }
 0x1ee   : > { %v2224_v4 = vpop.f32.mrf.mxu1  ;;  %v2270_v50 = vmul.f32 %v2141_v8, %v2141_v8  ;;  %v2153_v60 = vadd.f32 %v5219_v36, %v1880_v10  ;;  %v1976_v48 = vadd.f32 %v1975_v30, %v1669_v12  ;;  %v2273_v59 = vmul.f32 %v2159_v13, %v2159_v13 }
 0x1ef   : > { %v2298_v41 = vadd.f32 %v2282_v1, %v2266_v5  ;;  %v2285_v52 = vmul.f32 %v2231_v21, %v2231_v21  ;;  %v2225_v2 = vadd.f32 %v2224_v4, %v1952_v25 }
 0x1f0   : > { %v3315_v42 = vpop.f32.mrf.mxu1  ;;  %v2272_v25 = vmul.f32 %v2153_v60, %v2153_v60 }
 0x1f1   : > { %v2301_v49 = vadd.f32 %v2285_v52, %v2269_v20  ;;  %v2284_v57 = vmul.f32 %v2225_v2, %v2225_v2  ;;  %v2243_v27 = vadd.f32 %v3315_v42, %v1970_v6  ;;  %v2314_v26 = vpack.c.bf16 %v2299_v33, %v2298_v41 }
 0x1f2   : > { %v2236_v31 = vpop.f32.mrf.mxu1 }
 0x1f3   : > { %v2300_v63 = vadd.f32 %v2284_v57, %v2268_v18  ;;  %v2287_v14 = vmul.f32 %v2243_v27, %v2243_v27  ;;  %v2237_v11 = vadd.f32 %v2236_v31, %v1964_v7 }
 0x1f4   : > { %v3318_v45 = vpop.f32.mrf.mxu1 }
 0x1f5   : > { %v2303_v23 = vadd.f32 %v2287_v14, %v2271_v62  ;;  %v2286_v3 = vmul.f32 %v2237_v11, %v2237_v11  ;;  %v2255_v61 = vadd.f32 %v3318_v45, %v1982_v34  ;;  %v2315_v54 = vpack.c.bf16 %v2301_v49, %v2300_v63 }
 0x1f6   : > { %v2248_v40 = vpop.f32.mrf.mxu1 }
 0x1f7   : > { %v2302_v37 = vadd.f32 %v2286_v3, %v2270_v50  ;;  %v2289_v5 = vmul.f32 %v2255_v61, %v2255_v61  ;;  %v2249_v35 = vadd.f32 %v2248_v40, %v1976_v48 }
 0x1f9   : > { %v2305_v32 = vadd.f32 %v2289_v5, %v2273_v59  ;;  %v2288_v33 = vmul.f32 %v2249_v35, %v2249_v35  ;;  %v2316_v1 = vpack.c.bf16 %v2303_v23, %v2302_v37 }
 0x1fb   : > { %v2304_v55 = vadd.f32 %v2288_v33, %v2272_v25 }
 0x1fd   : > { %v2317_v21 = vpack.c.bf16 %v2305_v32, %v2304_v55 }
 0x1ff   : > { %3319 = vmatprep.subr.bf16.mxu0 %v2317_v21 }
 0x200   : > { %3320 = vmatpush3.bf16.msra.mxu0 %v2317_v21 }
 0x201   : > { %3321 = vmatprep.subr.bf16.mxu0 %v2316_v1 }
 0x204   : > { %3322 = vmatpush3.bf16.msra.mxu0 %v2316_v1 }
 0x205   : > { %3323 = vmatprep.subr.bf16.mxu0 %v2315_v54 }
 0x208   : > { %3324 = vmatpush3.bf16.msra.mxu0 %v2315_v54 }
 0x209   : > { %3325 = vmatprep.subr.bf16.mxu0 %v2314_v26 }
 0x20c   : > { %3326 = vmatpush3.bf16.msra.mxu0 %v2314_v26 }
 0x20d   : > { %3327 = vmatprep.subr.bf16.mxu0 %v2313_v9 }
 0x210   : > { %3328 = vmatpush3.bf16.msra.mxu0 %v2313_v9 }
 0x211   : > { %3329 = vmatprep.subr.bf16.mxu0 %v4829_v39 }
 0x214   : > { %3330 = vmatpush3.bf16.msra.mxu0 %v4829_v39 }
 0x215   : > { %3331 = vmatprep.subr.bf16.mxu0 %v4815_v56 }
 0x218   : > { %3332 = vmatpush3.bf16.msra.mxu0 %v4815_v56 }
 0x219   : > { %3333 = vmatprep.subr.bf16.mxu0 %v4805_v19 }
 0x21c   : > { %3334 = vmatpush3.bf16.msra.mxu0 %v4805_v19 }
 0x21f   : > { %3336 = vmatmul.mubr.bf16.vlgmr.msra.gmra.mxu0 %v3429_v0 }
 0x2df   : > { %v3337_v51 = vpop.f32.mrf.mxu0 }
 0x2e0   : > { %v2373_v47 = vadd.f32 1e-05, %v3337_v51 }
 0x2e1   : > { %v2364_v28 = vpop.f32.mrf.mxu0 }
 0x2e2   : > { %3430 = vlog2.f32 %v2373_v47  ;;  %v2365_v9 = vadd.f32 1e-05, %v2364_v28 }
 0x2e3   : > { %v3338_v20 = vpop.f32.mrf.mxu0 }
 0x2e4   : > { %3432 = vlog2.f32 %v2365_v9  ;;  %v2376_v17 = vadd.f32 1e-05, %v3338_v20 }
 0x2e5   : > { %v2367_v39 = vpop.f32.mrf.mxu0 }
 0x2e6   : > { %3434 = vlog2.f32 %v2376_v17  ;;  %v2368_v29 = vadd.f32 1e-05, %v2367_v39 }
 0x2e8   : > { %3436 = vlog2.f32 %v2368_v29 }
 0x2ef   : > { %v3431_v56 = vpop.eup %3430 }
 0x2f0   : > { %v2384_v4 = vmul.f32 0.6931472, %v3431_v56 }
 0x2f1   : > { %v3433_v16 = vpop.eup %3432 }
 0x2f2   : > { %v2389_v6 = vadd.f32 4.5, %v2384_v4  ;;  %v2380_v19 = vmul.f32 0.6931472, %v3433_v16 }
 0x2f3   : > { %v3435_v41 = vpop.eup %3434 }
 0x2f4   : > { %v2393_v52 = vmul.f32 0.2, %v2389_v6  ;;  %v2387_v2 = vadd.f32 4.5, %v2380_v19  ;;  %v2386_v15 = vmul.f32 0.6931472, %v3435_v41 }
 0x2f5   : > { %v3437_v46 = vpop.eup %3436 }
 0x2f6   : > { %2397 = vst [vmem:[%s234_s22 + $0x10] sm:$0xff] %v2393_v52  ;;  %v2391_v22 = vmul.f32 0.2, %v2387_v2  ;;  %v2390_v18 = vadd.f32 4.5, %v2386_v15  ;;  %v2382_v44 = vmul.f32 0.6931472, %v3437_v46 }
 0x2f8   : > { %2395 = vst [vmem:[%s234_s22] sm:$0xff] %v2391_v22  ;;  %v2394_v8 = vmul.f32 0.2, %v2390_v18  ;;  %v2388_v24 = vadd.f32 4.5, %v2382_v44 }
 0x2fa   : > { %2398 = vst [vmem:[%s234_s22 + $0x18] sm:$0xff] %v2394_v8  ;;  %v2392_v7 = vmul.f32 0.2, %v2388_v24 }
 0x2fc   : > { %2396 = vst [vmem:[%s234_s22 + $0x8] sm:$0xff] %v2392_v7 }
 0x2fd   : > { %3531 = shalt.err (!%p3528_p2)
}
 0x2fe   : > { %s3532_s30 = scalar_lea.hbm %s4868_s11, 512  ;;  %s3536_s7 = scalar_lea.hbm %s4919_s3, 1024 }
 0x2ff   : > { %p3533_p9 = scmp.ne.s32.totalorder %s4868_s11, %s3532_s30  ;;  %p3537_p0 = scmp.lt.s32.totalorder %s4868_s11, %s4919_s3 }
 0x300   : > { %p3538_p7 = scmp.lt.s32.totalorder %s3536_s7, %s3532_s30 }
 0x301   : > { %p3534_p12 = pnand %p3533_p9, %p3732_p3 }
 0x302   : > { %p3539_p5 = por %p3538_p7, %p3537_p0 }
 0x303   : > { %p3535_p13 = pneg %p3534_p12 }
 0x305   : > { %p3540_p1 = pnand %p3539_p5, %p3535_p13 }
 0x307   : > { %3543 = shalt.err (!%p3540_p1)
}
 0x308   : > { %s3612_s22 = smov 128   ;;  %s3613_s5 = smov 8  }
 0x309   : > { %3349 = dma.vmem_to_hbm [thread:$0]  (%p3732_p3), %s4863_s24, 512, %s4868_s11, %s2400_s21, %s3612_s22, %s3612_s22, %s3613_s5  }
 0x30a PF: > { %s2429_s9 = sand.u32 1, %s3582_s12   ;;  %p5220_p4 = scmp.ne.s32.totalorder %s5034_s23, 0 }
 0x30b   : > { %p5221_p6 = scmp.ge.s32.totalorder %s3602_s17, 2  ;;  %s2430_s10 = scalar_lea.sflag [#allocation4], %s2429_s9 }
 0x30d   : > { %p3363_p8 = pnand %p5221_p6, %p5220_p4 }
 0x30f   : > { %p3364_p10 = pneg %p3363_p8 }
 0x311   : > { %3577 = dma.done.wait (%p3364_p10), %s2430_s10, 512  }
 0x312   : > { %3579 = vsyncadd (%p3364_p10), %s2430_s10, 4294966784  ;;  %s20_s17 = sadd.s32 1, %s3602_s17   ;;  %s5222_s12 = smov %s3586_s13 }
 0x313   : > { %p17_p11 = scmp.ge.s32.totalorder %s20_s17, 4   ;;  %s5223_s13 = smov %s3590_s14 }
 0x314   : > { %s5224_s14 = smov %s3741_s6  ;;  %s5225_s15 = smov %s3598_s16 }
 0x315   : > { %s5226_s16 = smov %s5228_s19  ;;  %19 = sbr.rel (!%p17_p11) target bundleno = 7 (0x7), region = 85 }
 0x31a   :  { %2435 = vsyncpa [#allocation3], 1 }
 0x31b   :  { %2437 = vsyncpa [#allocation3 + $0x1], 1 }
 0x31c   :  { %2438 = vsyncpa [#allocation6], 1 }
 0x31d   :  { %2439 = vsyncpa [#allocation4], 1 }
 0x31e   :  { %2441 = vsyncpa [#allocation4 + $0x1], 1 }

</bundles_post_ra>
